<compile_context>
chip_gen: v7x
topology: tpu7x:2x2x1
jax: 0.10.0
libtpu: 0.0.40
codegen_flags: <defaults>
</compile_context>

<pallas_src>
import functools

import jax
import jax.numpy as jnp
from jax.experimental import pallas as pl
from jax.experimental.pallas import tpu as pltpu

INPUT = 28
SEQ = 28
HIDDEN = 128
OUT = 10
OUT_PAD = 128          # lane-dense fc output; real logits are columns [:OUT]


def _round_up(n, m):
    return ((n + m - 1) // m) * m


def _rnn_kernel(x_ref, w_ih_ref, w_hh_ref, b_ref, w_fc_ref, b_fc_ref,
                out_ref, pre_ref, *, tile_b, seq, matmul_dtype):
    # ---- Prologue: input projection for every time step of this batch tile.
    # x_ref rows are (t*tile_b + b_local); one (SEQ*TILE_B, 28) @ (28, 128)
    # matmul + folded (b_ih + b_hh).  K=28 underfills the MXU regardless, so
    # this stays f32 (x keeps full input precision).
    pre_ref[...] = (
        jnp.dot(x_ref[...], w_ih_ref[...], preferred_element_type=jnp.float32)
        + b_ref[...])

    # ---- Recurrence: h_t = tanh(pre[t] + h_{t-1} @ W_hh^T)
    # Hoist W_hh out of the loop: single VMEM load, same MXU RHS for all 28
    # steps.  h is carried in f32 and cast to matmul_dtype (bf16 by default)
    # only for the MXU operand; accumulation stays f32.
    w_hh = w_hh_ref[...]

    def step(t, h):
        row0 = pl.multiple_of(t * tile_b, 8)          # sublane-aligned row block
        p_t = pre_ref[pl.ds(row0, tile_b), :]
        hh = jnp.dot(h.astype(matmul_dtype), w_hh,
                     preferred_element_type=jnp.float32)
        return jnp.tanh(p_t + hh)

    h0 = jnp.zeros((tile_b, HIDDEN), jnp.float32)
    # Tiny tiles: fully unroll (LLO sees the whole serial chain, no spill risk).
    # Large tiles: visible loop (unroll=4) bounds live ranges / avoids spills.
    unroll = seq if tile_b <= 8 else 4
    h = jax.lax.fori_loop(0, seq, step, h0, unroll=unroll)

    # ---- Fused lane-dense classifier head (padded to 128 output lanes).
    out_ref[...] = (
        jnp.dot(h.astype(matmul_dtype), w_fc_ref[...],
                preferred_element_type=jnp.float32)
        + b_fc_ref[...]).astype(out_ref.dtype)


def simple_rnn_forward(x, w_ih, w_hh, b_ih, b_hh, w_fc, b_fc, *,
                       tile_b=256, matmul_dtype=jnp.bfloat16):
    """Forward pass matching the PyTorch SimpleRNN module.

    tile_b: batch rows per grid step (multiple of 8).  256 fits comfortably in
      scoped VMEM on v5e/v6e/v7x; sweep 512-1024 on v6e (128 MiB VMEM).
    matmul_dtype: MXU operand dtype for the recurrence + fc head.  bf16 cuts
      MXU passes ~3x vs f32 on every generation; use jnp.float32 for exactness.
    """
    # x.view(-1, 28, 28) equivalent.
    x = x.reshape(-1, SEQ, INPUT).astype(jnp.float32)
    B = x.shape[0]

    # Tile the batch; never tile bigger than the (sublane-padded) batch itself.
    tile_b = max(8, min(_round_up(tile_b, 8), _round_up(B, 8)))
    bp = _round_up(B, tile_b)
    if bp != B:
        x = jnp.pad(x, ((0, bp - B), (0, 0), (0, 0)))
    num_tiles = bp // tile_b

    # Group rows per batch tile, time-major within a tile, so each grid step's
    # x block is a contiguous (SEQ*TILE_B, 28) slab and each time step is a
    # sublane-aligned row block of the per-tile `pre` scratch.
    # row index inside a tile = t*tile_b + b_local.
    x_rows = (x.reshape(num_tiles, tile_b, SEQ, INPUT)
               .transpose(0, 2, 1, 3)
               .reshape(num_tiles * SEQ * tile_b, INPUT))

    # Weight prep: transpose so the kernel does (rows) @ (in, out), fold the two
    # RNN biases, pad the fc head to 128 output lanes (unmasked vst).  The
    # recurrence / fc weights are stored in matmul_dtype (bf16 by default).
    w_ih_t = w_ih.T.astype(jnp.float32)                               # (28, 128)
    w_hh_t = w_hh.T.astype(matmul_dtype)                              # (128, 128)
    b_rnn = (b_ih + b_hh).reshape(1, HIDDEN).astype(jnp.float32)
    w_fc_pad = jnp.zeros((HIDDEN, OUT_PAD), matmul_dtype).at[:, :OUT].set(
        w_fc.T.astype(matmul_dtype))
    b_fc_pad = jnp.zeros((1, OUT_PAD), jnp.float32).at[:, :OUT].set(
        b_fc.astype(jnp.float32))

    # VMEM budget: double-buffered x tile (28-lane minor dim pads to 128 lanes),
    # the f32 pre scratch, double-buffered out tile, plus weights.
    x_tile_bytes = SEQ * tile_b * 128 * 4
    pre_bytes = SEQ * tile_b * HIDDEN * 4
    out_bytes = tile_b * OUT_PAD * 4
    wgt_bytes = 4 * (INPUT * HIDDEN + HIDDEN * HIDDEN + HIDDEN * OUT_PAD
                     + HIDDEN + OUT_PAD)
    need = 2 * x_tile_bytes + pre_bytes + 2 * out_bytes + wgt_bytes
    vmem_limit = int(min(max(32 * 1024 * 1024, 1.5 * need), 64 * 1024 * 1024))

    kernel = functools.partial(_rnn_kernel, tile_b=tile_b, seq=SEQ,
                               matmul_dtype=matmul_dtype)

    out = pl.pallas_call(
        kernel,
        out_shape=jax.ShapeDtypeStruct((bp, OUT_PAD), jnp.float32),
        grid_spec=pltpu.PrefetchScalarGridSpec(
            num_scalar_prefetch=0,
            grid=(num_tiles,),
            in_specs=[
                pl.BlockSpec((SEQ * tile_b, INPUT), lambda i: (i, 0)),   # x tile
                pl.BlockSpec((INPUT, HIDDEN), lambda i: (0, 0)),         # W_ih^T
                pl.BlockSpec((HIDDEN, HIDDEN), lambda i: (0, 0)),        # W_hh^T
                pl.BlockSpec((1, HIDDEN), lambda i: (0, 0)),             # b_ih+b_hh
                pl.BlockSpec((HIDDEN, OUT_PAD), lambda i: (0, 0)),       # W_fc^T
                pl.BlockSpec((1, OUT_PAD), lambda i: (0, 0)),            # b_fc
            ],
            out_specs=pl.BlockSpec((tile_b, OUT_PAD), lambda i: (i, 0)),
            scratch_shapes=[pltpu.VMEM((SEQ * tile_b, HIDDEN), jnp.float32)],
        ),
        compiler_params=pltpu.CompilerParams(
            dimension_semantics=("parallel",),       # megacore on v7x
            vmem_limit_bytes=vmem_limit),
    )(x_rows, w_ih_t, w_hh_t, b_rnn, w_fc_pad, b_fc_pad)

    return out[:B, :OUT]


def init_params(key):
    # Deterministic init mimicking PyTorch's U(-1/sqrt(H), 1/sqrt(H)).
    ks = jax.random.split(key, 6)
    bound = 1.0 / jnp.sqrt(jnp.float32(HIDDEN))
    u = lambda k, shape: jax.random.uniform(k, shape, jnp.float32, -bound, bound)
    w_ih = u(ks[0], (HIDDEN, INPUT))      # weight_ih_l0
    w_hh = u(ks[1], (HIDDEN, HIDDEN))     # weight_hh_l0
    b_ih = u(ks[2], (HIDDEN,))
    b_hh = u(ks[3], (HIDDEN,))
    w_fc = u(ks[4], (OUT, HIDDEN))
    b_fc = u(ks[5], (OUT,))
    return w_ih, w_hh, b_ih, b_hh, w_fc, b_fc


def reference_forward(x, w_ih, w_hh, b_ih, b_hh, w_fc, b_fc,
                      matmul_dtype=jnp.float32):
    # Pure-JAX mirror of the PyTorch module.  matmul_dtype mimics the kernel's
    # optional bf16 MXU operands (accumulation stays f32 either way).
    xs = x.reshape(-1, SEQ, INPUT).astype(jnp.float32)
    B = xs.shape[0]
    w_hh_t = w_hh.T.astype(matmul_dtype)
    w_fc_t = w_fc.T.astype(matmul_dtype)
    h = jnp.zeros((B, HIDDEN), jnp.float32)
    for t in range(SEQ):
        hh = jnp.dot(h.astype(matmul_dtype), w_hh_t,
                     preferred_element_type=jnp.float32)
        h = jnp.tanh(xs[:, t, :] @ w_ih.T + b_ih + b_hh + hh)
    fc = jnp.dot(h.astype(matmul_dtype), w_fc_t,
                 preferred_element_type=jnp.float32)
    return fc + b_fc


if __name__ == "__main__":
    key = jax.random.PRNGKey(0)
    kx1, kx2, kp = jax.random.split(key, 3)
    params = init_params(kp)

    # 1) f32 MXU path, single batch tile: exact functional check vs reference.
    x1 = jax.random.normal(kx1, (8, 28, 28), jnp.float32)
    out1 = jax.block_until_ready(
        simple_rnn_forward(x1, *params, matmul_dtype=jnp.float32))
    ref1 = reference_forward(x1, *params)
    assert out1.shape == (8, OUT), out1.shape
    assert jnp.allclose(out1, ref1, atol=1e-4, rtol=1e-4), \
        float(jnp.max(jnp.abs(out1 - ref1)))

    # 2) f32 path exercising a multi-tile batch grid with padding
    #    (B=40, tile_b=16 -> bp=48, grid=(3,)).
    x2 = jax.random.normal(kx2, (40, 28, 28), jnp.float32)
    out2 = jax.block_until_ready(
        simple_rnn_forward(x2, *params, tile_b=16, matmul_dtype=jnp.float32))
    ref2 = reference_forward(x2, *params)
    assert out2.shape == (40, OUT), out2.shape
    assert jnp.allclose(out2, ref2, atol=1e-4, rtol=1e-4), \
        float(jnp.max(jnp.abs(out2 - ref2)))

    # 3) Default perf path (bf16 MXU operands) vs a bf16-matmul reference.
    out3 = jax.block_until_ready(simple_rnn_forward(x1, *params))
    ref3 = reference_forward(x1, *params, matmul_dtype=jnp.bfloat16)
    assert jnp.allclose(out3, ref3, atol=5e-3, rtol=5e-3), \
        float(jnp.max(jnp.abs(out3 - ref3)))

    print("KERNEL_OK")
</pallas_src>

<mosaic_0001>
module attributes {stable_mosaic.version = 11 : i64} {
  func.func @_rnn_kernel(%arg0: i32, %arg1: memref<224x28xf32, #tpu.memory_space<vmem>>, %arg2: memref<28x128xf32, #tpu.memory_space<vmem>>, %arg3: memref<128x128xf32, #tpu.memory_space<vmem>>, %arg4: memref<1x128xf32, #tpu.memory_space<vmem>>, %arg5: memref<128x128xf32, #tpu.memory_space<vmem>>, %arg6: memref<1x128xf32, #tpu.memory_space<vmem>>, %arg7: memref<8x128xf32, #tpu.memory_space<vmem>>, %arg8: memref<224x128xf32, #tpu.memory_space<vmem>>) attributes {dimension_semantics = [#tpu.dimension_semantics<parallel>], iteration_bounds = array<i64: 1>, scalar_prefetch = 0 : i64, scratch_operands = 1 : i64, tpu.core_type = #tpu.core_type<tc>, window_params = [{transform_indices = @transform_0, window_bounds = array<i64: 224, 28>}, {pipeline_mode = #tpu.pipeline_mode<synchronous>, transform_indices = @transform_1, window_bounds = array<i64: 28, 128>}, {pipeline_mode = #tpu.pipeline_mode<synchronous>, transform_indices = @transform_2, window_bounds = array<i64: 128, 128>}, {pipeline_mode = #tpu.pipeline_mode<synchronous>, transform_indices = @transform_3, window_bounds = array<i64: 1, 128>}, {pipeline_mode = #tpu.pipeline_mode<synchronous>, transform_indices = @transform_4, window_bounds = array<i64: 128, 128>}, {pipeline_mode = #tpu.pipeline_mode<synchronous>, transform_indices = @transform_5, window_bounds = array<i64: 1, 128>}, {transform_indices = @transform_6, window_bounds = array<i64: 8, 128>}]} {
    %c0 = arith.constant 0 : index
    %c0_0 = arith.constant 0 : index
    %0 = vector.load %arg1[%c0, %c0_0] : memref<224x28xf32, #tpu.memory_space<vmem>>, vector<224x28xf32>
    %c0_1 = arith.constant 0 : index
    %c0_2 = arith.constant 0 : index
    %1 = vector.load %arg2[%c0_1, %c0_2] : memref<28x128xf32, #tpu.memory_space<vmem>>, vector<28x128xf32>
    %cst = arith.constant dense<0.000000e+00> : vector<224x128xf32>
    %2 = tpu.matmul %0, %1, %cst {dimension_numbers = #tpu.dot_dimension_numbers<[1], [0], [0], [1], [0, 0, 1, 1], [], []>} : vector<224x28xf32>, vector<28x128xf32>, vector<224x128xf32> -> vector<224x128xf32>
    %c0_3 = arith.constant 0 : index
    %c0_4 = arith.constant 0 : index
    %3 = vector.load %arg4[%c0_3, %c0_4] : memref<1x128xf32, #tpu.memory_space<vmem>>, vector<1x128xf32>
    %4 = vector.broadcast %3 : vector<1x128xf32> to vector<224x128xf32>
    %5 = arith.addf %2, %4 : vector<224x128xf32>
    %c0_5 = arith.constant 0 : index
    %c0_6 = arith.constant 0 : index
    %6 = vector.load %arg8[%c0_5, %c0_6] : memref<224x128xf32, #tpu.memory_space<vmem>>, vector<224x128xf32>
    tpu.vector_store %arg8[%c0_5, %c0_6], %5 {strides = array<i32>} : memref<224x128xf32, #tpu.memory_space<vmem>>, vector<224x128xf32>,
    %c0_7 = arith.constant 0 : index
    %c0_8 = arith.constant 0 : index
    %7 = vector.load %arg3[%c0_7, %c0_8] : memref<128x128xf32, #tpu.memory_space<vmem>>, vector<128x128xf32>
    %cst_9 = arith.constant 0.000000e+00 : f32
    %8 = vector.broadcast %cst_9 : f32 to vector<8x128xf32>
    %c0_i32 = arith.constant 0 : i32
    %c8_i32 = arith.constant 8 : i32
    %9 = arith.muli %c0_i32, %c8_i32 : i32
    %10 = tpu.assume_multiple %9, 8 : i32
    %11 = arith.index_cast %10 : i32 to index
    %c0_10 = arith.constant 0 : index
    %12 = vector.load %arg8[%11, %c0_10] : memref<224x128xf32, #tpu.memory_space<vmem>>, vector<8x128xf32>
    %cst_11 = arith.constant dense<0.000000e+00> : vector<8x128xf32>
    %13 = tpu.matmul %8, %7, %cst_11 {dimension_numbers = #tpu.dot_dimension_numbers<[1], [0], [0], [1], [0, 0, 1, 1], [], []>} : vector<8x128xf32>, vector<128x128xf32>, vector<8x128xf32> -> vector<8x128xf32>
    %14 = arith.addf %12, %13 : vector<8x128xf32>
    %15 = math.tanh %14 : vector<8x128xf32>
    %c1_i32 = arith.constant 1 : i32
    %c8_i32_12 = arith.constant 8 : i32
    %16 = arith.muli %c1_i32, %c8_i32_12 : i32
    %17 = tpu.assume_multiple %16, 8 : i32
    %18 = arith.index_cast %17 : i32 to index
    %c0_13 = arith.constant 0 : index
    %19 = vector.load %arg8[%18, %c0_13] : memref<224x128xf32, #tpu.memory_space<vmem>>, vector<8x128xf32>
    %cst_14 = arith.constant dense<0.000000e+00> : vector<8x128xf32>
    %20 = tpu.matmul %15, %7, %cst_14 {dimension_numbers = #tpu.dot_dimension_numbers<[1], [0], [0], [1], [0, 0, 1, 1], [], []>} : vector<8x128xf32>, vector<128x128xf32>, vector<8x128xf32> -> vector<8x128xf32>
    %21 = arith.addf %19, %20 : vector<8x128xf32>
    %22 = math.tanh %21 : vector<8x128xf32>
    %c2_i32 = arith.constant 2 : i32
    %c8_i32_15 = arith.constant 8 : i32
    %23 = arith.muli %c2_i32, %c8_i32_15 : i32
    %24 = tpu.assume_multiple %23, 8 : i32
    %25 = arith.index_cast %24 : i32 to index
    %c0_16 = arith.constant 0 : index
    %26 = vector.load %arg8[%25, %c0_16] : memref<224x128xf32, #tpu.memory_space<vmem>>, vector<8x128xf32>
    %cst_17 = arith.constant dense<0.000000e+00> : vector<8x128xf32>
    %27 = tpu.matmul %22, %7, %cst_17 {dimension_numbers = #tpu.dot_dimension_numbers<[1], [0], [0], [1], [0, 0, 1, 1], [], []>} : vector<8x128xf32>, vector<128x128xf32>, vector<8x128xf32> -> vector<8x128xf32>
    %28 = arith.addf %26, %27 : vector<8x128xf32>
    %29 = math.tanh %28 : vector<8x128xf32>
    %c3_i32 = arith.constant 3 : i32
    %c8_i32_18 = arith.constant 8 : i32
    %30 = arith.muli %c3_i32, %c8_i32_18 : i32
    %31 = tpu.assume_multiple %30, 8 : i32
    %32 = arith.index_cast %31 : i32 to index
    %c0_19 = arith.constant 0 : index
    %33 = vector.load %arg8[%32, %c0_19] : memref<224x128xf32, #tpu.memory_space<vmem>>, vector<8x128xf32>
    %cst_20 = arith.constant dense<0.000000e+00> : vector<8x128xf32>
    %34 = tpu.matmul %29, %7, %cst_20 {dimension_numbers = #tpu.dot_dimension_numbers<[1], [0], [0], [1], [0, 0, 1, 1], [], []>} : vector<8x128xf32>, vector<128x128xf32>, vector<8x128xf32> -> vector<8x128xf32>
    %35 = arith.addf %33, %34 : vector<8x128xf32>
    %36 = math.tanh %35 : vector<8x128xf32>
    %c4_i32 = arith.constant 4 : i32
    %c8_i32_21 = arith.constant 8 : i32
    %37 = arith.muli %c4_i32, %c8_i32_21 : i32
    %38 = tpu.assume_multiple %37, 8 : i32
    %39 = arith.index_cast %38 : i32 to index
    %c0_22 = arith.constant 0 : index
    %40 = vector.load %arg8[%39, %c0_22] : memref<224x128xf32, #tpu.memory_space<vmem>>, vector<8x128xf32>
    %cst_23 = arith.constant dense<0.000000e+00> : vector<8x128xf32>
    %41 = tpu.matmul %36, %7, %cst_23 {dimension_numbers = #tpu.dot_dimension_numbers<[1], [0], [0], [1], [0, 0, 1, 1], [], []>} : vector<8x128xf32>, vector<128x128xf32>, vector<8x128xf32> -> vector<8x128xf32>
    %42 = arith.addf %40, %41 : vector<8x128xf32>
    %43 = math.tanh %42 : vector<8x128xf32>
    %c5_i32 = arith.constant 5 : i32
    %c8_i32_24 = arith.constant 8 : i32
    %44 = arith.muli %c5_i32, %c8_i32_24 : i32
    %45 = tpu.assume_multiple %44, 8 : i32
    %46 = arith.index_cast %45 : i32 to index
    %c0_25 = arith.constant 0 : index
    %47 = vector.load %arg8[%46, %c0_25] : memref<224x128xf32, #tpu.memory_space<vmem>>, vector<8x128xf32>
    %cst_26 = arith.constant dense<0.000000e+00> : vector<8x128xf32>
    %48 = tpu.matmul %43, %7, %cst_26 {dimension_numbers = #tpu.dot_dimension_numbers<[1], [0], [0], [1], [0, 0, 1, 1], [], []>} : vector<8x128xf32>, vector<128x128xf32>, vector<8x128xf32> -> vector<8x128xf32>
    %49 = arith.addf %47, %48 : vector<8x128xf32>
    %50 = math.tanh %49 : vector<8x128xf32>
    %c6_i32 = arith.constant 6 : i32
    %c8_i32_27 = arith.constant 8 : i32
    %51 = arith.muli %c6_i32, %c8_i32_27 : i32
    %52 = tpu.assume_multiple %51, 8 : i32
    %53 = arith.index_cast %52 : i32 to index
    %c0_28 = arith.constant 0 : index
    %54 = vector.load %arg8[%53, %c0_28] : memref<224x128xf32, #tpu.memory_space<vmem>>, vector<8x128xf32>
    %cst_29 = arith.constant dense<0.000000e+00> : vector<8x128xf32>
    %55 = tpu.matmul %50, %7, %cst_29 {dimension_numbers = #tpu.dot_dimension_numbers<[1], [0], [0], [1], [0, 0, 1, 1], [], []>} : vector<8x128xf32>, vector<128x128xf32>, vector<8x128xf32> -> vector<8x128xf32>
    %56 = arith.addf %54, %55 : vector<8x128xf32>
    %57 = math.tanh %56 : vector<8x128xf32>
    %c7_i32 = arith.constant 7 : i32
    %c8_i32_30 = arith.constant 8 : i32
    %58 = arith.muli %c7_i32, %c8_i32_30 : i32
    %59 = tpu.assume_multiple %58, 8 : i32
    %60 = arith.index_cast %59 : i32 to index
    %c0_31 = arith.constant 0 : index
    %61 = vector.load %arg8[%60, %c0_31] : memref<224x128xf32, #tpu.memory_space<vmem>>, vector<8x128xf32>
    %cst_32 = arith.constant dense<0.000000e+00> : vector<8x128xf32>
    %62 = tpu.matmul %57, %7, %cst_32 {dimension_numbers = #tpu.dot_dimension_numbers<[1], [0], [0], [1], [0, 0, 1, 1], [], []>} : vector<8x128xf32>, vector<128x128xf32>, vector<8x128xf32> -> vector<8x128xf32>
    %63 = arith.addf %61, %62 : vector<8x128xf32>
    %64 = math.tanh %63 : vector<8x128xf32>
    %c8_i32_33 = arith.constant 8 : i32
    %c8_i32_34 = arith.constant 8 : i32
    %65 = arith.muli %c8_i32_33, %c8_i32_34 : i32
    %66 = tpu.assume_multiple %65, 8 : i32
    %67 = arith.index_cast %66 : i32 to index
    %c0_35 = arith.constant 0 : index
    %68 = vector.load %arg8[%67, %c0_35] : memref<224x128xf32, #tpu.memory_space<vmem>>, vector<8x128xf32>
    %cst_36 = arith.constant dense<0.000000e+00> : vector<8x128xf32>
    %69 = tpu.matmul %64, %7, %cst_36 {dimension_numbers = #tpu.dot_dimension_numbers<[1], [0], [0], [1], [0, 0, 1, 1], [], []>} : vector<8x128xf32>, vector<128x128xf32>, vector<8x128xf32> -> vector<8x128xf32>
    %70 = arith.addf %68, %69 : vector<8x128xf32>
    %71 = math.tanh %70 : vector<8x128xf32>
    %c9_i32 = arith.constant 9 : i32
    %c8_i32_37 = arith.constant 8 : i32
    %72 = arith.muli %c9_i32, %c8_i32_37 : i32
    %73 = tpu.assume_multiple %72, 8 : i32
    %74 = arith.index_cast %73 : i32 to index
    %c0_38 = arith.constant 0 : index
    %75 = vector.load %arg8[%74, %c0_38] : memref<224x128xf32, #tpu.memory_space<vmem>>, vector<8x128xf32>
    %cst_39 = arith.constant dense<0.000000e+00> : vector<8x128xf32>
    %76 = tpu.matmul %71, %7, %cst_39 {dimension_numbers = #tpu.dot_dimension_numbers<[1], [0], [0], [1], [0, 0, 1, 1], [], []>} : vector<8x128xf32>, vector<128x128xf32>, vector<8x128xf32> -> vector<8x128xf32>
    %77 = arith.addf %75, %76 : vector<8x128xf32>
    %78 = math.tanh %77 : vector<8x128xf32>
    %c10_i32 = arith.constant 10 : i32
    %c8_i32_40 = arith.constant 8 : i32
    %79 = arith.muli %c10_i32, %c8_i32_40 : i32
    %80 = tpu.assume_multiple %79, 8 : i32
    %81 = arith.index_cast %80 : i32 to index
    %c0_41 = arith.constant 0 : index
    %82 = vector.load %arg8[%81, %c0_41] : memref<224x128xf32, #tpu.memory_space<vmem>>, vector<8x128xf32>
    %cst_42 = arith.constant dense<0.000000e+00> : vector<8x128xf32>
    %83 = tpu.matmul %78, %7, %cst_42 {dimension_numbers = #tpu.dot_dimension_numbers<[1], [0], [0], [1], [0, 0, 1, 1], [], []>} : vector<8x128xf32>, vector<128x128xf32>, vector<8x128xf32> -> vector<8x128xf32>
    %84 = arith.addf %82, %83 : vector<8x128xf32>
    %85 = math.tanh %84 : vector<8x128xf32>
    %c11_i32 = arith.constant 11 : i32
    %c8_i32_43 = arith.constant 8 : i32
    %86 = arith.muli %c11_i32, %c8_i32_43 : i32
    %87 = tpu.assume_multiple %86, 8 : i32
    %88 = arith.index_cast %87 : i32 to index
    %c0_44 = arith.constant 0 : index
    %89 = vector.load %arg8[%88, %c0_44] : memref<224x128xf32, #tpu.memory_space<vmem>>, vector<8x128xf32>
    %cst_45 = arith.constant dense<0.000000e+00> : vector<8x128xf32>
    %90 = tpu.matmul %85, %7, %cst_45 {dimension_numbers = #tpu.dot_dimension_numbers<[1], [0], [0], [1], [0, 0, 1, 1], [], []>} : vector<8x128xf32>, vector<128x128xf32>, vector<8x128xf32> -> vector<8x128xf32>
    %91 = arith.addf %89, %90 : vector<8x128xf32>
    %92 = math.tanh %91 : vector<8x128xf32>
    %c12_i32 = arith.constant 12 : i32
    %c8_i32_46 = arith.constant 8 : i32
    %93 = arith.muli %c12_i32, %c8_i32_46 : i32
    %94 = tpu.assume_multiple %93, 8 : i32
    %95 = arith.index_cast %94 : i32 to index
    %c0_47 = arith.constant 0 : index
    %96 = vector.load %arg8[%95, %c0_47] : memref<224x128xf32, #tpu.memory_space<vmem>>, vector<8x128xf32>
    %cst_48 = arith.constant dense<0.000000e+00> : vector<8x128xf32>
    %97 = tpu.matmul %92, %7, %cst_48 {dimension_numbers = #tpu.dot_dimension_numbers<[1], [0], [0], [1], [0, 0, 1, 1], [], []>} : vector<8x128xf32>, vector<128x128xf32>, vector<8x128xf32> -> vector<8x128xf32>
    %98 = arith.addf %96, %97 : vector<8x128xf32>
    %99 = math.tanh %98 : vector<8x128xf32>
    %c13_i32 = arith.constant 13 : i32
    %c8_i32_49 = arith.constant 8 : i32
    %100 = arith.muli %c13_i32, %c8_i32_49 : i32
    %101 = tpu.assume_multiple %100, 8 : i32
    %102 = arith.index_cast %101 : i32 to index
    %c0_50 = arith.constant 0 : index
    %103 = vector.load %arg8[%102, %c0_50] : memref<224x128xf32, #tpu.memory_space<vmem>>, vector<8x128xf32>
    %cst_51 = arith.constant dense<0.000000e+00> : vector<8x128xf32>
    %104 = tpu.matmul %99, %7, %cst_51 {dimension_numbers = #tpu.dot_dimension_numbers<[1], [0], [0], [1], [0, 0, 1, 1], [], []>} : vector<8x128xf32>, vector<128x128xf32>, vector<8x128xf32> -> vector<8x128xf32>
    %105 = arith.addf %103, %104 : vector<8x128xf32>
    %106 = math.tanh %105 : vector<8x128xf32>
    %c14_i32 = arith.constant 14 : i32
    %c8_i32_52 = arith.constant 8 : i32
    %107 = arith.muli %c14_i32, %c8_i32_52 : i32
    %108 = tpu.assume_multiple %107, 8 : i32
    %109 = arith.index_cast %108 : i32 to index
    %c0_53 = arith.constant 0 : index
    %110 = vector.load %arg8[%109, %c0_53] : memref<224x128xf32, #tpu.memory_space<vmem>>, vector<8x128xf32>
    %cst_54 = arith.constant dense<0.000000e+00> : vector<8x128xf32>
    %111 = tpu.matmul %106, %7, %cst_54 {dimension_numbers = #tpu.dot_dimension_numbers<[1], [0], [0], [1], [0, 0, 1, 1], [], []>} : vector<8x128xf32>, vector<128x128xf32>, vector<8x128xf32> -> vector<8x128xf32>
    %112 = arith.addf %110, %111 : vector<8x128xf32>
    %113 = math.tanh %112 : vector<8x128xf32>
    %c15_i32 = arith.constant 15 : i32
    %c8_i32_55 = arith.constant 8 : i32
    %114 = arith.muli %c15_i32, %c8_i32_55 : i32
    %115 = tpu.assume_multiple %114, 8 : i32
    %116 = arith.index_cast %115 : i32 to index
    %c0_56 = arith.constant 0 : index
    %117 = vector.load %arg8[%116, %c0_56] : memref<224x128xf32, #tpu.memory_space<vmem>>, vector<8x128xf32>
    %cst_57 = arith.constant dense<0.000000e+00> : vector<8x128xf32>
    %118 = tpu.matmul %113, %7, %cst_57 {dimension_numbers = #tpu.dot_dimension_numbers<[1], [0], [0], [1], [0, 0, 1, 1], [], []>} : vector<8x128xf32>, vector<128x128xf32>, vector<8x128xf32> -> vector<8x128xf32>
    %119 = arith.addf %117, %118 : vector<8x128xf32>
    %120 = math.tanh %119 : vector<8x128xf32>
    %c16_i32 = arith.constant 16 : i32
    %c8_i32_58 = arith.constant 8 : i32
    %121 = arith.muli %c16_i32, %c8_i32_58 : i32
    %122 = tpu.assume_multiple %121, 8 : i32
    %123 = arith.index_cast %122 : i32 to index
    %c0_59 = arith.constant 0 : index
    %124 = vector.load %arg8[%123, %c0_59] : memref<224x128xf32, #tpu.memory_space<vmem>>, vector<8x128xf32>
    %cst_60 = arith.constant dense<0.000000e+00> : vector<8x128xf32>
    %125 = tpu.matmul %120, %7, %cst_60 {dimension_numbers = #tpu.dot_dimension_numbers<[1], [0], [0], [1], [0, 0, 1, 1], [], []>} : vector<8x128xf32>, vector<128x128xf32>, vector<8x128xf32> -> vector<8x128xf32>
    %126 = arith.addf %124, %125 : vector<8x128xf32>
    %127 = math.tanh %126 : vector<8x128xf32>
    %c17_i32 = arith.constant 17 : i32
    %c8_i32_61 = arith.constant 8 : i32
    %128 = arith.muli %c17_i32, %c8_i32_61 : i32
    %129 = tpu.assume_multiple %128, 8 : i32
    %130 = arith.index_cast %129 : i32 to index
    %c0_62 = arith.constant 0 : index
    %131 = vector.load %arg8[%130, %c0_62] : memref<224x128xf32, #tpu.memory_space<vmem>>, vector<8x128xf32>
    %cst_63 = arith.constant dense<0.000000e+00> : vector<8x128xf32>
    %132 = tpu.matmul %127, %7, %cst_63 {dimension_numbers = #tpu.dot_dimension_numbers<[1], [0], [0], [1], [0, 0, 1, 1], [], []>} : vector<8x128xf32>, vector<128x128xf32>, vector<8x128xf32> -> vector<8x128xf32>
    %133 = arith.addf %131, %132 : vector<8x128xf32>
    %134 = math.tanh %133 : vector<8x128xf32>
    %c18_i32 = arith.constant 18 : i32
    %c8_i32_64 = arith.constant 8 : i32
    %135 = arith.muli %c18_i32, %c8_i32_64 : i32
    %136 = tpu.assume_multiple %135, 8 : i32
    %137 = arith.index_cast %136 : i32 to index
    %c0_65 = arith.constant 0 : index
    %138 = vector.load %arg8[%137, %c0_65] : memref<224x128xf32, #tpu.memory_space<vmem>>, vector<8x128xf32>
    %cst_66 = arith.constant dense<0.000000e+00> : vector<8x128xf32>
    %139 = tpu.matmul %134, %7, %cst_66 {dimension_numbers = #tpu.dot_dimension_numbers<[1], [0], [0], [1], [0, 0, 1, 1], [], []>} : vector<8x128xf32>, vector<128x128xf32>, vector<8x128xf32> -> vector<8x128xf32>
    %140 = arith.addf %138, %139 : vector<8x128xf32>
    %141 = math.tanh %140 : vector<8x128xf32>
    %c19_i32 = arith.constant 19 : i32
    %c8_i32_67 = arith.constant 8 : i32
    %142 = arith.muli %c19_i32, %c8_i32_67 : i32
    %143 = tpu.assume_multiple %142, 8 : i32
    %144 = arith.index_cast %143 : i32 to index
    %c0_68 = arith.constant 0 : index
    %145 = vector.load %arg8[%144, %c0_68] : memref<224x128xf32, #tpu.memory_space<vmem>>, vector<8x128xf32>
    %cst_69 = arith.constant dense<0.000000e+00> : vector<8x128xf32>
    %146 = tpu.matmul %141, %7, %cst_69 {dimension_numbers = #tpu.dot_dimension_numbers<[1], [0], [0], [1], [0, 0, 1, 1], [], []>} : vector<8x128xf32>, vector<128x128xf32>, vector<8x128xf32> -> vector<8x128xf32>
    %147 = arith.addf %145, %146 : vector<8x128xf32>
    %148 = math.tanh %147 : vector<8x128xf32>
    %c20_i32 = arith.constant 20 : i32
    %c8_i32_70 = arith.constant 8 : i32
    %149 = arith.muli %c20_i32, %c8_i32_70 : i32
    %150 = tpu.assume_multiple %149, 8 : i32
    %151 = arith.index_cast %150 : i32 to index
    %c0_71 = arith.constant 0 : index
    %152 = vector.load %arg8[%151, %c0_71] : memref<224x128xf32, #tpu.memory_space<vmem>>, vector<8x128xf32>
    %cst_72 = arith.constant dense<0.000000e+00> : vector<8x128xf32>
    %153 = tpu.matmul %148, %7, %cst_72 {dimension_numbers = #tpu.dot_dimension_numbers<[1], [0], [0], [1], [0, 0, 1, 1], [], []>} : vector<8x128xf32>, vector<128x128xf32>, vector<8x128xf32> -> vector<8x128xf32>
    %154 = arith.addf %152, %153 : vector<8x128xf32>
    %155 = math.tanh %154 : vector<8x128xf32>
    %c21_i32 = arith.constant 21 : i32
    %c8_i32_73 = arith.constant 8 : i32
    %156 = arith.muli %c21_i32, %c8_i32_73 : i32
    %157 = tpu.assume_multiple %156, 8 : i32
    %158 = arith.index_cast %157 : i32 to index
    %c0_74 = arith.constant 0 : index
    %159 = vector.load %arg8[%158, %c0_74] : memref<224x128xf32, #tpu.memory_space<vmem>>, vector<8x128xf32>
    %cst_75 = arith.constant dense<0.000000e+00> : vector<8x128xf32>
    %160 = tpu.matmul %155, %7, %cst_75 {dimension_numbers = #tpu.dot_dimension_numbers<[1], [0], [0], [1], [0, 0, 1, 1], [], []>} : vector<8x128xf32>, vector<128x128xf32>, vector<8x128xf32> -> vector<8x128xf32>
    %161 = arith.addf %159, %160 : vector<8x128xf32>
    %162 = math.tanh %161 : vector<8x128xf32>
    %c22_i32 = arith.constant 22 : i32
    %c8_i32_76 = arith.constant 8 : i32
    %163 = arith.muli %c22_i32, %c8_i32_76 : i32
    %164 = tpu.assume_multiple %163, 8 : i32
    %165 = arith.index_cast %164 : i32 to index
    %c0_77 = arith.constant 0 : index
    %166 = vector.load %arg8[%165, %c0_77] : memref<224x128xf32, #tpu.memory_space<vmem>>, vector<8x128xf32>
    %cst_78 = arith.constant dense<0.000000e+00> : vector<8x128xf32>
    %167 = tpu.matmul %162, %7, %cst_78 {dimension_numbers = #tpu.dot_dimension_numbers<[1], [0], [0], [1], [0, 0, 1, 1], [], []>} : vector<8x128xf32>, vector<128x128xf32>, vector<8x128xf32> -> vector<8x128xf32>
    %168 = arith.addf %166, %167 : vector<8x128xf32>
    %169 = math.tanh %168 : vector<8x128xf32>
    %c23_i32 = arith.constant 23 : i32
    %c8_i32_79 = arith.constant 8 : i32
    %170 = arith.muli %c23_i32, %c8_i32_79 : i32
    %171 = tpu.assume_multiple %170, 8 : i32
    %172 = arith.index_cast %171 : i32 to index
    %c0_80 = arith.constant 0 : index
    %173 = vector.load %arg8[%172, %c0_80] : memref<224x128xf32, #tpu.memory_space<vmem>>, vector<8x128xf32>
    %cst_81 = arith.constant dense<0.000000e+00> : vector<8x128xf32>
    %174 = tpu.matmul %169, %7, %cst_81 {dimension_numbers = #tpu.dot_dimension_numbers<[1], [0], [0], [1], [0, 0, 1, 1], [], []>} : vector<8x128xf32>, vector<128x128xf32>, vector<8x128xf32> -> vector<8x128xf32>
    %175 = arith.addf %173, %174 : vector<8x128xf32>
    %176 = math.tanh %175 : vector<8x128xf32>
    %c24_i32 = arith.constant 24 : i32
    %c8_i32_82 = arith.constant 8 : i32
    %177 = arith.muli %c24_i32, %c8_i32_82 : i32
    %178 = tpu.assume_multiple %177, 8 : i32
    %179 = arith.index_cast %178 : i32 to index
    %c0_83 = arith.constant 0 : index
    %180 = vector.load %arg8[%179, %c0_83] : memref<224x128xf32, #tpu.memory_space<vmem>>, vector<8x128xf32>
    %cst_84 = arith.constant dense<0.000000e+00> : vector<8x128xf32>
    %181 = tpu.matmul %176, %7, %cst_84 {dimension_numbers = #tpu.dot_dimension_numbers<[1], [0], [0], [1], [0, 0, 1, 1], [], []>} : vector<8x128xf32>, vector<128x128xf32>, vector<8x128xf32> -> vector<8x128xf32>
    %182 = arith.addf %180, %181 : vector<8x128xf32>
    %183 = math.tanh %182 : vector<8x128xf32>
    %c25_i32 = arith.constant 25 : i32
    %c8_i32_85 = arith.constant 8 : i32
    %184 = arith.muli %c25_i32, %c8_i32_85 : i32
    %185 = tpu.assume_multiple %184, 8 : i32
    %186 = arith.index_cast %185 : i32 to index
    %c0_86 = arith.constant 0 : index
    %187 = vector.load %arg8[%186, %c0_86] : memref<224x128xf32, #tpu.memory_space<vmem>>, vector<8x128xf32>
    %cst_87 = arith.constant dense<0.000000e+00> : vector<8x128xf32>
    %188 = tpu.matmul %183, %7, %cst_87 {dimension_numbers = #tpu.dot_dimension_numbers<[1], [0], [0], [1], [0, 0, 1, 1], [], []>} : vector<8x128xf32>, vector<128x128xf32>, vector<8x128xf32> -> vector<8x128xf32>
    %189 = arith.addf %187, %188 : vector<8x128xf32>
    %190 = math.tanh %189 : vector<8x128xf32>
    %c26_i32 = arith.constant 26 : i32
    %c8_i32_88 = arith.constant 8 : i32
    %191 = arith.muli %c26_i32, %c8_i32_88 : i32
    %192 = tpu.assume_multiple %191, 8 : i32
    %193 = arith.index_cast %192 : i32 to index
    %c0_89 = arith.constant 0 : index
    %194 = vector.load %arg8[%193, %c0_89] : memref<224x128xf32, #tpu.memory_space<vmem>>, vector<8x128xf32>
    %cst_90 = arith.constant dense<0.000000e+00> : vector<8x128xf32>
    %195 = tpu.matmul %190, %7, %cst_90 {dimension_numbers = #tpu.dot_dimension_numbers<[1], [0], [0], [1], [0, 0, 1, 1], [], []>} : vector<8x128xf32>, vector<128x128xf32>, vector<8x128xf32> -> vector<8x128xf32>
    %196 = arith.addf %194, %195 : vector<8x128xf32>
    %197 = math.tanh %196 : vector<8x128xf32>
    %c27_i32 = arith.constant 27 : i32
    %c8_i32_91 = arith.constant 8 : i32
    %198 = arith.muli %c27_i32, %c8_i32_91 : i32
    %199 = tpu.assume_multiple %198, 8 : i32
    %200 = arith.index_cast %199 : i32 to index
    %c0_92 = arith.constant 0 : index
    %201 = vector.load %arg8[%200, %c0_92] : memref<224x128xf32, #tpu.memory_space<vmem>>, vector<8x128xf32>
    %cst_93 = arith.constant dense<0.000000e+00> : vector<8x128xf32>
    %202 = tpu.matmul %197, %7, %cst_93 {dimension_numbers = #tpu.dot_dimension_numbers<[1], [0], [0], [1], [0, 0, 1, 1], [], []>} : vector<8x128xf32>, vector<128x128xf32>, vector<8x128xf32> -> vector<8x128xf32>
    %203 = arith.addf %201, %202 : vector<8x128xf32>
    %204 = math.tanh %203 : vector<8x128xf32>
    %c28_i32 = arith.constant 28 : i32
    %c0_94 = arith.constant 0 : index
    %c0_95 = arith.constant 0 : index
    %205 = vector.load %arg5[%c0_94, %c0_95] : memref<128x128xf32, #tpu.memory_space<vmem>>, vector<128x128xf32>
    %cst_96 = arith.constant dense<0.000000e+00> : vector<8x128xf32>
    %206 = tpu.matmul %204, %205, %cst_96 {dimension_numbers = #tpu.dot_dimension_numbers<[1], [0], [0], [1], [0, 0, 1, 1], [], []>} : vector<8x128xf32>, vector<128x128xf32>, vector<8x128xf32> -> vector<8x128xf32>
    %c0_97 = arith.constant 0 : index
    %c0_98 = arith.constant 0 : index
    %207 = vector.load %arg6[%c0_97, %c0_98] : memref<1x128xf32, #tpu.memory_space<vmem>>, vector<1x128xf32>
    %208 = vector.broadcast %207 : vector<1x128xf32> to vector<8x128xf32>
    %209 = arith.addf %206, %208 : vector<8x128xf32>
    %c0_99 = arith.constant 0 : index
    %c0_100 = arith.constant 0 : index
    %210 = vector.load %arg7[%c0_99, %c0_100] : memref<8x128xf32, #tpu.memory_space<vmem>>, vector<8x128xf32>
    tpu.vector_store %arg7[%c0_99, %c0_100], %209 {strides = array<i32>} : memref<8x128xf32, #tpu.memory_space<vmem>>, vector<8x128xf32>,
    return
  }
  func.func @transform_0(%arg0: i32) -> (i32, i32) {
    %c0_i32 = arith.constant 0 : i32
    %c0_i32_0 = arith.constant 0 : i32
    return %arg0, %c0_i32 : i32, i32
  }
  func.func @transform_1(%arg0: i32) -> (i32, i32) {
    %c0_i32 = arith.constant 0 : i32
    %c0_i32_0 = arith.constant 0 : i32
    %c0_i32_1 = arith.constant 0 : i32
    return %c0_i32, %c0_i32_0 : i32, i32
  }
  func.func @transform_2(%arg0: i32) -> (i32, i32) {
    %c0_i32 = arith.constant 0 : i32
    %c0_i32_0 = arith.constant 0 : i32
    %c0_i32_1 = arith.constant 0 : i32
    return %c0_i32, %c0_i32_0 : i32, i32
  }
  func.func @transform_3(%arg0: i32) -> (i32, i32) {
    %c0_i32 = arith.constant 0 : i32
    %c0_i32_0 = arith.constant 0 : i32
    %c0_i32_1 = arith.constant 0 : i32
    return %c0_i32, %c0_i32_0 : i32, i32
  }
  func.func @transform_4(%arg0: i32) -> (i32, i32) {
    %c0_i32 = arith.constant 0 : i32
    %c0_i32_0 = arith.constant 0 : i32
    %c0_i32_1 = arith.constant 0 : i32
    return %c0_i32, %c0_i32_0 : i32, i32
  }
  func.func @transform_5(%arg0: i32) -> (i32, i32) {
    %c0_i32 = arith.constant 0 : i32
    %c0_i32_0 = arith.constant 0 : i32
    %c0_i32_1 = arith.constant 0 : i32
    return %c0_i32, %c0_i32_0 : i32, i32
  }
  func.func @transform_6(%arg0: i32) -> (i32, i32) {
    %c0_i32 = arith.constant 0 : i32
    %c0_i32_0 = arith.constant 0 : i32
    return %arg0, %c0_i32 : i32, i32
  }
}

</mosaic_0001>

<bundles_post_ra>
// kernel: tpu_custom_call.1
= control target key start
LH: loop header
LB: loop body
LE: loop exit
PB: predicated region body
PF: predicated region fallthrough
CT: control target
= control target key end

     0   :  { %v4993_v3 = vmov 0.0|0.0   ;;  %vm148_vm0 = vcmask 1043456   ;;  %vm4994_vm1 = vmmov 0   ;;  %v4995_v6 = vmov 0.0   ;;  %s5916_s0 = inlined_call_operand.vmem [shape: f32[224,28], index: 0, kind: input, shape index: {}]   ;;  %s5917_s1 = inlined_call_operand.vmem [shape: f32[28,128], index: 1, kind: input, shape index: {}]   ;;  %s5918_s2 = inlined_call_operand.vmem [shape: f32[128,128], index: 2, kind: input, shape index: {}]   ;;  %s5919_s3 = inlined_call_operand.vmem [shape: f32[1,128], index: 3, kind: input, shape index: {}]   ;;  %s5920_s4 = inlined_call_operand.vmem [shape: f32[128,128], index: 4, kind: input, shape index: {}]   ;;  %s5921_s5 = inlined_call_operand.vmem [shape: f32[1,128], index: 5, kind: input, shape index: {}]   ;;  %s5922_s6 = inlined_call_operand.hbm [shape: f32[8,128], index: 6, kind: output, shape index: {}]  }
   0x1   :  { %v385_v0 = vld [vmem:[%s5918_s2] sm:$0xff]  ;;  %v386_v1 = vld [vmem:[%s5918_s2 + $0x8] sm:$0xff]  ;;  %v387_v2 = vld [vmem:[%s5918_s2 + $0x10] sm:$0xff]  ;;  %4211 = vmatprep.subr.bf16.mxu1 %v4993_v3  ;;  %3218 = vmatprep.mubr.msk.f32.mxu1 %vm4994_vm1, %v4995_v6  ;;  %vm4996_vm2 = vmmov 1   ;;  %vm63_vm4 = vcmask 228352  }
   0x2   :  { %v5043_v4 = vpack.c.bf16 %v386_v1, %v385_v0  ;;  %v388_v5 = vld [vmem:[%s5918_s2 + $0x18] sm:$0xff]  ;;  %v52_v8 = vld [vmem:[%s5917_s1] sm:$0xff]  ;;  %v53_v9 = vld [vmem:[%s5917_s1 + $0x8] sm:$0xff] }
   0x3   :  { %v5051_v7 = vpack.c.bf16 %v388_v5, %v387_v2  ;;  %v389_v10 = vld [vmem:[%s5918_s2 + $0x20] sm:$0xff]  ;;  %v390_v11 = vld [vmem:[%s5918_s2 + $0x28] sm:$0xff]  ;;  %v4201_v12 = vpack.c.bf16 %v53_v9, %v52_v8  ;;  %v54_v13 = vld [vmem:[%s5917_s1 + $0x10] sm:$0xff] }
   0x4   :  { %4213 = vmatpush3.bf16.msra.mxu1 %v5043_v4  ;;  %v55_v14 = vld [vmem:[%s5917_s1 + $0x18] sm:$0xf]  ;;  %vm4206_vm3 = vmpackc.low %vm148_vm0, %vm4996_vm2  ;;  %v24_v16 = vld [vmem:[%s5916_s0] sm:$0xff]  ;;  %v5077_v17 = vpack.c.bf16 %v390_v11, %v389_v10 }
   0x5   :  { %4214 = vmatprep.subr.bf16.mxu1 %v4993_v3  ;;  %4202 = vmatprep.subr.bf16.mxu0 %v4201_v12  ;;  %v4205_v15 = vpack.c.bf16 %v55_v14, %v54_v13  ;;  %v391_v18 = vld [vmem:[%s5918_s2 + $0x30] sm:$0xff]  ;;  %v392_v19 = vld [vmem:[%s5918_s2 + $0x38] sm:$0xff]  ;;  %v25_v21 = vld [vmem:[%s5916_s0 + $0x8] sm:$0xff] }
   0x6   :  { %4204 = vmatpush3.bf16.msra.mxu0 %v4201_v12  ;;  %3144 = vmatprep.mubr.msk.f32.mxu0 %vm63_vm4, %v24_v16  ;;  %v5088_v20 = vpack.c.bf16 %v392_v19, %v391_v18  ;;  %v393_v22 = vld [vmem:[%s5918_s2 + $0x40] sm:$0xff]  ;;  %v394_v23 = vld [vmem:[%s5918_s2 + $0x48] sm:$0xff]  ;;  %v26_v24 = vld [vmem:[%s5916_s0 + $0x10] sm:$0xff] }
   0x7   :  { %4207 = vmatprep.subr.msk.bf16.mxu0 %vm4206_vm3, %v4205_v15 }
   0x8   :  { %4216 = vmatpush3.bf16.msra.mxu1 %v5051_v7 }
   0x9   :  { %4217 = vmatprep.subr.bf16.mxu1 %v4993_v3 }
   0xa   :  { %4210 = vmatpush3.bf16.msk.msra.mxu0 %vm4206_vm3, %v4205_v15 }
   0xb   :  { %4235 = vmatprep.subr.bf16.mxu0 %v4993_v3 }
   0xc   :  { %4219 = vmatpush3.bf16.msra.mxu1 %v5077_v17 }
   0xd   :  { %4220 = vmatprep.subr.bf16.mxu1 %v4993_v3 }
   0xe   :  { %11 = vsyncpa [#allocation4], 0  ;;  %3145 = vmatmul.mubr.msk.f32.vlgmr.msra.gmra.mrb[0].mxu0 %vm63_vm4, %v25_v21  ;;  %v5106_v25 = vpack.c.bf16 %v394_v23, %v393_v22  ;;  %v27_v26 = vld [vmem:[%s5916_s0 + $0x18] sm:$0xff]  ;;  %v395_v27 = vld [vmem:[%s5918_s2 + $0x50] sm:$0xff]  ;;  %s4997_s23 = smov [#allocation3]  }
   0xf   :  { %4237 = vmatpush3.bf16.msra.mxu0 %v5043_v4  ;;  %v396_v28 = vld [vmem:[%s5918_s2 + $0x58] sm:$0xff]  ;;  %3147 = vmatprep.mubr.msk.f32.mxu0 %vm63_vm4, %v26_v24  ;;  %v28_v29 = vld [vmem:[%s5916_s0 + $0x20] sm:$0xff]  ;;  %v29_v31 = vld [vmem:[%s5916_s0 + $0x28] sm:$0xff] }
  0x10   :  { %4222 = vmatpush3.bf16.msra.mxu1 %v5088_v20  ;;  %4238 = vmatprep.subr.bf16.mxu0 %v4993_v3  ;;  %v5126_v30 = vpack.c.bf16 %v396_v28, %v395_v27  ;;  %v397_v32 = vld [vmem:[%s5918_s2 + $0x60] sm:$0xff]  ;;  %v398_v33 = vld [vmem:[%s5918_s2 + $0x68] sm:$0xff]  ;;  %v30_v34 = vld [vmem:[%s5916_s0 + $0x30] sm:$0xff] }
  0x11   :  { %4223 = vmatprep.subr.bf16.mxu1 %v4993_v3  ;;  %v5146_v35 = vpack.c.bf16 %v398_v33, %v397_v32  ;;  %v31_v36 = vld [vmem:[%s5916_s0 + $0x38] sm:$0xff]  ;;  %v399_v37 = vld [vmem:[%s5918_s2 + $0x70] sm:$0xff]  ;;  %v32_v39 = vld [vmem:[%s5916_s0 + $0x40] sm:$0xff] }
  0x12   :  { %3148 = vmatmul.mubr.msk.f32.gmra.mrb[2].mxu0 %vm63_vm4, %v27_v26  ;;  %v400_v38 = vld [vmem:[%s5918_s2 + $0x78] sm:$0xff]  ;;  %v33_v41 = vld [vmem:[%s5916_s0 + $0x48] sm:$0xff]  ;;  %v34_v42 = vld [vmem:[%s5916_s0 + $0x50] sm:$0xff] }
  0x13   :  { %3150 = vmatprep.mubr.msk.f32.mxu0 %vm63_vm4, %v28_v29  ;;  %4240 = vmatpush3.bf16.msra.mxu0 %v5051_v7  ;;  %v5166_v40 = vpack.c.bf16 %v400_v38, %v399_v37  ;;  %v35_v43 = vld [vmem:[%s5916_s0 + $0x58] sm:$0xff]  ;;  %v36_v44 = vld [vmem:[%s5916_s0 + $0x60] sm:$0xff]  ;;  %v37_v45 = vld [vmem:[%s5916_s0 + $0x68] sm:$0xff] }
  0x14   :  { %4225 = vmatpush3.bf16.msra.mxu1 %v5106_v25  ;;  %4241 = vmatprep.subr.bf16.mxu0 %v4993_v3  ;;  %v38_v46 = vld [vmem:[%s5916_s0 + $0x70] sm:$0xff]  ;;  %v39_v47 = vld [vmem:[%s5916_s0 + $0x78] sm:$0xff]  ;;  %v40_v48 = vld [vmem:[%s5916_s0 + $0x80] sm:$0xff] }
  0x15   :  { %4226 = vmatprep.subr.bf16.mxu1 %v4993_v3  ;;  %v41_v49 = vld [vmem:[%s5916_s0 + $0x88] sm:$0xff]  ;;  %v42_v50 = vld [vmem:[%s5916_s0 + $0x90] sm:$0xff]  ;;  %v43_v51 = vld [vmem:[%s5916_s0 + $0x98] sm:$0xff] }
  0x16   :  { %3151 = vmatmul.mubr.msk.f32.gmra.mrb[4].mxu0 %vm63_vm4, %v29_v31  ;;  %v44_v52 = vld [vmem:[%s5916_s0 + $0xa0] sm:$0xff]  ;;  %v45_v53 = vld [vmem:[%s5916_s0 + $0xa8] sm:$0xff]  ;;  %v46_v54 = vld [vmem:[%s5916_s0 + $0xb0] sm:$0xff] }
  0x17   :  { %3153 = vmatprep.mubr.msk.f32.mxu0 %vm63_vm4, %v30_v34  ;;  %4243 = vmatpush3.bf16.msra.mxu0 %v5077_v17  ;;  %v47_v55 = vld [vmem:[%s5916_s0 + $0xb8] sm:$0xff]  ;;  %v48_v56 = vld [vmem:[%s5916_s0 + $0xc0] sm:$0xff]  ;;  %v49_v57 = vld [vmem:[%s5916_s0 + $0xc8] sm:$0xff] }
  0x18   :  { %4228 = vmatpush3.bf16.msra.mxu1 %v5126_v30  ;;  %4244 = vmatprep.subr.bf16.mxu0 %v4993_v3  ;;  %v50_v58 = vld [vmem:[%s5916_s0 + $0xd0] sm:$0xff]  ;;  %v51_v59 = vld [vmem:[%s5916_s0 + $0xd8] sm:$0xff]  ;;  %v5294_v8 = vld [vmem:[%s5919_s3] ss:$0 sm:$0xff] }
  0x19   :  { %4229 = vmatprep.subr.bf16.mxu1 %v4993_v3 }
  0x1a   :  { %3154 = vmatmul.mubr.msk.f32.gmra.mrb[6].mxu0 %vm63_vm4, %v31_v36 }
  0x1b   :  { %3156 = vmatprep.mubr.msk.f32.mxu0 %vm63_vm4, %v32_v39  ;;  %4246 = vmatpush3.bf16.msra.mxu0 %v5088_v20 }
  0x1c   :  { %4231 = vmatpush3.bf16.msra.mxu1 %v5146_v35  ;;  %4247 = vmatprep.subr.bf16.mxu0 %v4993_v3 }
  0x1d   :  { %4232 = vmatprep.subr.bf16.mxu1 %v4993_v3 }
  0x1e   :  { %3157 = vmatmul.mubr.msk.f32.gmra.mrb[8].mxu0 %vm63_vm4, %v33_v41 }
  0x1f   :  { %3159 = vmatprep.mubr.msk.f32.mxu0 %vm63_vm4, %v34_v42  ;;  %4249 = vmatpush3.bf16.msra.mxu0 %v5106_v25 }
  0x20   :  { %4234 = vmatpush3.bf16.msra.mxu1 %v5166_v40  ;;  %4250 = vmatprep.subr.bf16.mxu0 %v4993_v3 }
  0x21   :  { %4259 = vmatprep.subr.bf16.mxu1 %v4993_v3 }
  0x22   :  { %3160 = vmatmul.mubr.msk.f32.gmra.mrb[10].mxu0 %vm63_vm4, %v35_v43 }
  0x23   :  { %3219 = vmatmul.mubr.f32.vlgmr.msra.gmra.mrb[0].mxu1 %v4995_v6  ;;  %3162 = vmatprep.mubr.msk.f32.mxu0 %vm63_vm4, %v36_v44 }
  0x24   :  { %4261 = vmatpush3.bf16.msra.mxu1 %v5043_v4  ;;  %4252 = vmatpush3.bf16.msra.mxu0 %v5126_v30 }
  0x25   :  { %4262 = vmatprep.subr.bf16.mxu1 %v4993_v3  ;;  %4253 = vmatprep.subr.bf16.mxu0 %v4993_v3 }
  0x26   :  { %3288 = vmatprep.mubr.msk.f32.mxu1 %vm4994_vm1, %v4995_v6  ;;  %3163 = vmatmul.mubr.msk.f32.gmra.mrb[12].mxu0 %vm63_vm4, %v37_v45 }
  0x27   :  { %3165 = vmatprep.mubr.msk.f32.mxu0 %vm63_vm4, %v38_v46 }
  0x28   :  { %4264 = vmatpush3.bf16.msra.mxu1 %v5051_v7  ;;  %4255 = vmatpush3.bf16.msra.mxu0 %v5146_v35 }
  0x29   :  { %4265 = vmatprep.subr.bf16.mxu1 %v4993_v3  ;;  %4256 = vmatprep.subr.bf16.mxu0 %v4993_v3 }
  0x2a   :  { %3166 = vmatmul.mubr.msk.f32.gmra.mrb[14].mxu0 %vm63_vm4, %v39_v47 }
  0x2b   :  { %3168 = vmatprep.mubr.msk.f32.mxu0 %vm63_vm4, %v40_v48 }
  0x2c   :  { %4267 = vmatpush3.bf16.msra.mxu1 %v5077_v17  ;;  %4258 = vmatpush3.bf16.msra.mxu0 %v5166_v40 }
  0x2d   :  { %4268 = vmatprep.subr.bf16.mxu1 %v4993_v3  ;;  %4283 = vmatprep.subr.bf16.mxu0 %v4993_v3 }
  0x2e   :  { %3169 = vmatmul.mubr.msk.f32.gmra.mrb[16].mxu0 %vm63_vm4, %v41_v49 }
  0x2f   :  { %3171 = vmatprep.mubr.msk.f32.mxu0 %vm63_vm4, %v42_v50 }
  0x30   :  { %4270 = vmatpush3.bf16.msra.mxu1 %v5088_v20 }
  0x31   :  { %4271 = vmatprep.subr.bf16.mxu1 %v4993_v3 }
  0x32   :  { %3172 = vmatmul.mubr.msk.f32.gmra.mrb[18].mxu0 %vm63_vm4, %v43_v51 }
  0x33   :  { %3174 = vmatprep.mubr.msk.f32.mxu0 %vm63_vm4, %v44_v52 }
  0x34   :  { %4273 = vmatpush3.bf16.msra.mxu1 %v5106_v25 }
  0x35   :  { %4274 = vmatprep.subr.bf16.mxu1 %v4993_v3 }
  0x36   :  { %3175 = vmatmul.mubr.msk.f32.gmra.mrb[20].mxu0 %vm63_vm4, %v45_v53 }
  0x37   :  { %3177 = vmatprep.mubr.msk.f32.mxu0 %vm63_vm4, %v46_v54 }
  0x38   :  { %4276 = vmatpush3.bf16.msra.mxu1 %v5126_v30 }
  0x39   :  { %4277 = vmatprep.subr.bf16.mxu1 %v4993_v3 }
  0x3a   :  { %3178 = vmatmul.mubr.msk.f32.gmra.mrb[22].mxu0 %vm63_vm4, %v47_v55 }
  0x3b   :  { %3180 = vmatprep.mubr.msk.f32.mxu0 %vm63_vm4, %v48_v56 }
  0x3c   :  { %4279 = vmatpush3.bf16.msra.mxu1 %v5146_v35 }
  0x3d   :  { %4280 = vmatprep.subr.bf16.mxu1 %v4993_v3 }
  0x3e   :  { %3181 = vmatmul.mubr.msk.f32.gmra.mrb[24].mxu0 %vm63_vm4, %v49_v57 }
  0x3f   :  { %3183 = vmatprep.mubr.msk.f32.mxu0 %vm63_vm4, %v50_v58 }
  0x40   :  { %4282 = vmatpush3.bf16.msra.mxu1 %v5166_v40 }
  0x41   :  { %4307 = vmatprep.subr.bf16.mxu1 %v4993_v3 }
  0x42   :  { %3184 = vmatmul.mubr.msk.f32.gmra.mrb[26].mxu0 %vm63_vm4, %v51_v59 }
  0x43   :  { %3253 = vmatprep.mubr.msk.f32.mxu0 %vm4994_vm1, %v4995_v6 }
  0xe1   :  { %v3146_v60 = vpop.f32.mrb[0].mxu0 }
  0xe2   :  { %v218_v61 = vpop.f32.mrb[1].mxu0  ;;  %v224_v39 = vadd.f32 %v3146_v60, %v5294_v8 }
  0xe3   :  { %v219_v10 = vadd.f32 %v5294_v8, %v218_v61 }
  0xe5   :  { %v5279_v62 = vpop.f32.mrb[2].mxu0 }
  0xe6   :  { %v5281_v63 = vpop.f32.mrb[3].mxu0  ;;  %v234_v50 = vadd.f32 %v5279_v62, %v5294_v8 }
  0xe7   :  { %v229_v45 = vadd.f32 %v5294_v8, %v5281_v63 }
  0xe9   :  { %v5283_v0 = vpop.f32.mrb[4].mxu0 }
  0xea   :  { %v5285_v1 = vpop.f32.mrb[5].mxu0  ;;  %v244_v60 = vadd.f32 %v5283_v0, %v5294_v8 }
  0xeb   :  { %v239_v55 = vadd.f32 %v5294_v8, %v5285_v1 }
  0xed   :  { %v5287_v2 = vpop.f32.mrb[6].mxu0 }
  0xee   :  { %v5289_v5 = vpop.f32.mrb[7].mxu0 }
  0xef   :  { %v249_v0 = vadd.f32 %v5294_v8, %v5289_v5  ;;  %v254_v5 = vadd.f32 %v5287_v2, %v5294_v8 }
  0xf1   :  { %v5296_v9 = vpop.f32.mrb[8].mxu0 }
  0xf2   :  { %v5299_v11 = vpop.f32.mrb[9].mxu0 }
  0xf3   :  { %v259_v2 = vadd.f32 %v5294_v8, %v5299_v11  ;;  %v264_v11 = vadd.f32 %v5296_v9, %v5294_v8 }
  0xf5   :  { %v5301_v13 = vpop.f32.mrb[10].mxu0 }
  0xf6   :  { %v468_v12 = vpop.f32.mrb[0].mxu1  ;;  %v5303_v16 = vpop.f32.mrb[11].mxu0 }
  0xf7   :  { %v472_v14 = vadd.f32 %v468_v12, %v219_v10  ;;  %v3220_v15 = vpop.f32.mrb[1].mxu1  ;;  %v269_v9 = vadd.f32 %v5294_v8, %v5303_v16  ;;  %v274_v16 = vadd.f32 %v5301_v13, %v5294_v8 }
  0xf9   :  { %4912 = vtanh.f32 %v472_v14  ;;  %v5305_v18 = vpop.f32.mrb[12].mxu0 }
  0xfa   :  { %v5307_v19 = vpop.f32.mrb[13].mxu0 }
  0xfb   :  { %v279_v13 = vadd.f32 %v5294_v8, %v5307_v19  ;;  %v284_v19 = vadd.f32 %v5305_v18, %v5294_v8 }
  0xfd   :  { %v5309_v21 = vpop.f32.mrb[14].mxu0 }
  0xfe   :  { %v5311_v22 = vpop.f32.mrb[15].mxu0 }
  0xff   :  { %v289_v18 = vadd.f32 %v5294_v8, %v5311_v22  ;;  %v294_v22 = vadd.f32 %v5309_v21, %v5294_v8 }
 0x101   :  { %v5313_v23 = vpop.f32.mrb[16].mxu0 }
 0x102   :  { %v5315_v26 = vpop.f32.mrb[17].mxu0 }
 0x103   :  { %v4913_v24 = vpop.eup %4912  ;;  %v299_v21 = vadd.f32 %v5294_v8, %v5315_v26  ;;  %v304_v26 = vadd.f32 %v5313_v23, %v5294_v8 }
 0x104   :  { %3254 = vmatmul.mubr.f32.vlgmr.msra.gmra.mrb[28].mxu0 %v4913_v24 }
 0x105   :  { %4285 = vmatpush3.bf16.msra.mxu0 %v5043_v4  ;;  %3323 = vmatprep.mubr.msk.f32.mxu0 %vm4994_vm1, %v4995_v6  ;;  %v5320_v27 = vpop.f32.mrb[18].mxu0 }
 0x106   :  { %4286 = vmatprep.subr.bf16.mxu0 %v4993_v3  ;;  %v5323_v28 = vpop.f32.mrb[19].mxu0 }
 0x107   :  { %v309_v23 = vadd.f32 %v5294_v8, %v5323_v28  ;;  %v314_v28 = vadd.f32 %v5320_v27, %v5294_v8 }
 0x109   :  { %4288 = vmatpush3.bf16.msra.mxu0 %v5051_v7  ;;  %v5339_v29 = vpop.f32.mrb[20].mxu0 }
 0x10a   :  { %4289 = vmatprep.subr.bf16.mxu0 %v4993_v3  ;;  %v5341_v31 = vpop.f32.mrb[21].mxu0 }
 0x10b   :  { %v319_v27 = vadd.f32 %v5294_v8, %v5341_v31  ;;  %v5757_v8 = vld [vmem:[%s5919_s3] ss:$0 sm:$0xff] }
 0x10c   :  { %v324_v31 = vadd.f32 %v5757_v8, %v5339_v29 }
 0x10d   :  { %4291 = vmatpush3.bf16.msra.mxu0 %v5077_v17  ;;  %v5343_v32 = vpop.f32.mrb[22].mxu0 }
 0x10e   :  { %4292 = vmatprep.subr.bf16.mxu0 %v4993_v3  ;;  %v5345_v33 = vpop.f32.mrb[23].mxu0 }
 0x10f   :  { %v329_v29 = vadd.f32 %v5757_v8, %v5345_v33  ;;  %v334_v33 = vadd.f32 %v5757_v8, %v5343_v32 }
 0x111   :  { %4294 = vmatpush3.bf16.msra.mxu0 %v5088_v20  ;;  %v5347_v34 = vpop.f32.mrb[24].mxu0 }
 0x112   :  { %4295 = vmatprep.subr.bf16.mxu0 %v4993_v3  ;;  %v5349_v36 = vpop.f32.mrb[25].mxu0 }
 0x113   :  { %v339_v32 = vadd.f32 %v5757_v8, %v5349_v36  ;;  %v2475_v36 = vld [vmem:[%s5920_s4 + $0x18] sm:$0xff] }
 0x115   :  { %4297 = vmatpush3.bf16.msra.mxu0 %v5106_v25  ;;  %v5351_v37 = vpop.f32.mrb[26].mxu0 }
 0x116   :  { %4298 = vmatprep.subr.bf16.mxu0 %v4993_v3  ;;  %v5353_v38 = vpop.f32.mrb[27].mxu0 }
 0x119   :  { %4300 = vmatpush3.bf16.msra.mxu0 %v5126_v30 }
 0x11a   :  { %4301 = vmatprep.subr.bf16.mxu0 %v4993_v3 }
 0x11d   :  { %4303 = vmatpush3.bf16.msra.mxu0 %v5146_v35 }
 0x11e   :  { %4304 = vmatprep.subr.bf16.mxu0 %v4993_v3 }
 0x121   :  { %4306 = vmatpush3.bf16.msra.mxu0 %v5166_v40 }
 0x122   :  { %4331 = vmatprep.subr.bf16.mxu0 %v4993_v3 }
 0x1d7   :  { %v542_v41 = vpop.f32.mrb[28].mxu0 }
 0x1d8   :  { %v546_v42 = vadd.f32 %v542_v41, %v224_v39  ;;  %v3255_v43 = vpop.f32.mrb[29].mxu0 }
 0x1da   :  { %4914 = vtanh.f32 %v546_v42 }
 0x1e4   :  { %v4915_v44 = vpop.eup %4914 }
 0x1e5   :  { %3289 = vmatmul.mubr.f32.vlgmr.msra.gmra.mrb[2].mxu1 %v4915_v44 }
 0x1e6   :  { %4309 = vmatpush3.bf16.msra.mxu1 %v5043_v4  ;;  %3358 = vmatprep.mubr.msk.f32.mxu1 %vm4994_vm1, %v4995_v6 }
 0x1e7   :  { %4310 = vmatprep.subr.bf16.mxu1 %v4993_v3 }
 0x1ea   :  { %4312 = vmatpush3.bf16.msra.mxu1 %v5051_v7 }
 0x1eb   :  { %4313 = vmatprep.subr.bf16.mxu1 %v4993_v3 }
 0x1ee   :  { %4315 = vmatpush3.bf16.msra.mxu1 %v5077_v17 }
 0x1ef   :  { %4316 = vmatprep.subr.bf16.mxu1 %v4993_v3 }
 0x1f2   :  { %4318 = vmatpush3.bf16.msra.mxu1 %v5088_v20 }
 0x1f3   :  { %4319 = vmatprep.subr.bf16.mxu1 %v4993_v3 }
 0x1f6   :  { %4321 = vmatpush3.bf16.msra.mxu1 %v5106_v25 }
 0x1f7   :  { %4322 = vmatprep.subr.bf16.mxu1 %v4993_v3 }
 0x1fa   :  { %4324 = vmatpush3.bf16.msra.mxu1 %v5126_v30 }
 0x1fb   :  { %4325 = vmatprep.subr.bf16.mxu1 %v4993_v3 }
 0x1fe   :  { %4327 = vmatpush3.bf16.msra.mxu1 %v5146_v35 }
 0x1ff   :  { %4328 = vmatprep.subr.bf16.mxu1 %v4993_v3 }
 0x202   :  { %4330 = vmatpush3.bf16.msra.mxu1 %v5166_v40 }
 0x203   :  { %4355 = vmatprep.subr.bf16.mxu1 %v4993_v3 }
 0x2b8   :  { %v616_v46 = vpop.f32.mrb[2].mxu1 }
 0x2b9   :  { %v620_v47 = vadd.f32 %v616_v46, %v229_v45  ;;  %v3290_v48 = vpop.f32.mrb[3].mxu1 }
 0x2bb   :  { %4916 = vtanh.f32 %v620_v47 }
 0x2c5   :  { %v4917_v49 = vpop.eup %4916 }
 0x2c6   :  { %3324 = vmatmul.mubr.f32.vlgmr.msra.gmra.mrb[30].mxu0 %v4917_v49 }
 0x2c7   :  { %4333 = vmatpush3.bf16.msra.mxu0 %v5043_v4  ;;  %3393 = vmatprep.mubr.msk.f32.mxu0 %vm4994_vm1, %v4995_v6 }
 0x2c8   :  { %4334 = vmatprep.subr.bf16.mxu0 %v4993_v3 }
 0x2cb   :  { %4336 = vmatpush3.bf16.msra.mxu0 %v5051_v7 }
 0x2cc   :  { %4337 = vmatprep.subr.bf16.mxu0 %v4993_v3 }
 0x2cf   :  { %4339 = vmatpush3.bf16.msra.mxu0 %v5077_v17 }
 0x2d0   :  { %4340 = vmatprep.subr.bf16.mxu0 %v4993_v3 }
 0x2d3   :  { %4342 = vmatpush3.bf16.msra.mxu0 %v5088_v20 }
 0x2d4   :  { %4343 = vmatprep.subr.bf16.mxu0 %v4993_v3 }
 0x2d7   :  { %4345 = vmatpush3.bf16.msra.mxu0 %v5106_v25 }
 0x2d8   :  { %4346 = vmatprep.subr.bf16.mxu0 %v4993_v3 }
 0x2db   :  { %4348 = vmatpush3.bf16.msra.mxu0 %v5126_v30 }
 0x2dc   :  { %4349 = vmatprep.subr.bf16.mxu0 %v4993_v3 }
 0x2df   :  { %4351 = vmatpush3.bf16.msra.mxu0 %v5146_v35 }
 0x2e0   :  { %4352 = vmatprep.subr.bf16.mxu0 %v4993_v3 }
 0x2e3   :  { %4354 = vmatpush3.bf16.msra.mxu0 %v5166_v40 }
 0x2e4   :  { %4379 = vmatprep.subr.bf16.mxu0 %v4993_v3 }
 0x399   :  { %v690_v51 = vpop.f32.mrb[30].mxu0 }
 0x39a   :  { %v694_v52 = vadd.f32 %v690_v51, %v234_v50  ;;  %v3325_v53 = vpop.f32.mrb[31].mxu0 }
 0x39c   :  { %4918 = vtanh.f32 %v694_v52 }
 0x3a6   :  { %v4919_v54 = vpop.eup %4918 }
 0x3a7   :  { %3359 = vmatmul.mubr.f32.vlgmr.msra.gmra.mrb[4].mxu1 %v4919_v54 }
 0x3a8   :  { %4357 = vmatpush3.bf16.msra.mxu1 %v5043_v4  ;;  %3428 = vmatprep.mubr.msk.f32.mxu1 %vm4994_vm1, %v4995_v6 }
 0x3a9   :  { %4358 = vmatprep.subr.bf16.mxu1 %v4993_v3 }
 0x3ac   :  { %4360 = vmatpush3.bf16.msra.mxu1 %v5051_v7 }
 0x3ad   :  { %4361 = vmatprep.subr.bf16.mxu1 %v4993_v3 }
 0x3b0   :  { %4363 = vmatpush3.bf16.msra.mxu1 %v5077_v17 }
 0x3b1   :  { %4364 = vmatprep.subr.bf16.mxu1 %v4993_v3 }
 0x3b4   :  { %4366 = vmatpush3.bf16.msra.mxu1 %v5088_v20 }
 0x3b5   :  { %4367 = vmatprep.subr.bf16.mxu1 %v4993_v3 }
 0x3b8   :  { %4369 = vmatpush3.bf16.msra.mxu1 %v5106_v25 }
 0x3b9   :  { %4370 = vmatprep.subr.bf16.mxu1 %v4993_v3 }
 0x3bc   :  { %4372 = vmatpush3.bf16.msra.mxu1 %v5126_v30 }
 0x3bd   :  { %4373 = vmatprep.subr.bf16.mxu1 %v4993_v3 }
 0x3c0   :  { %4375 = vmatpush3.bf16.msra.mxu1 %v5146_v35 }
 0x3c1   :  { %4376 = vmatprep.subr.bf16.mxu1 %v4993_v3 }
 0x3c4   :  { %4378 = vmatpush3.bf16.msra.mxu1 %v5166_v40 }
 0x3c5   :  { %4403 = vmatprep.subr.bf16.mxu1 %v4993_v3 }
 0x47a   :  { %v764_v56 = vpop.f32.mrb[4].mxu1 }
 0x47b   :  { %v768_v57 = vadd.f32 %v764_v56, %v239_v55  ;;  %v3360_v58 = vpop.f32.mrb[5].mxu1 }
 0x47d   :  { %4920 = vtanh.f32 %v768_v57 }
 0x487   :  { %v4921_v59 = vpop.eup %4920 }
 0x488   :  { %3394 = vmatmul.mubr.f32.vlgmr.msra.gmra.mrb[32].mxu0 %v4921_v59 }
 0x489   :  { %4381 = vmatpush3.bf16.msra.mxu0 %v5043_v4  ;;  %3463 = vmatprep.mubr.msk.f32.mxu0 %vm4994_vm1, %v4995_v6 }
 0x48a   :  { %4382 = vmatprep.subr.bf16.mxu0 %v4993_v3 }
 0x48d   :  { %4384 = vmatpush3.bf16.msra.mxu0 %v5051_v7 }
 0x48e   :  { %4385 = vmatprep.subr.bf16.mxu0 %v4993_v3 }
 0x491   :  { %4387 = vmatpush3.bf16.msra.mxu0 %v5077_v17 }
 0x492   :  { %4388 = vmatprep.subr.bf16.mxu0 %v4993_v3 }
 0x495   :  { %4390 = vmatpush3.bf16.msra.mxu0 %v5088_v20 }
 0x496   :  { %4391 = vmatprep.subr.bf16.mxu0 %v4993_v3 }
 0x499   :  { %4393 = vmatpush3.bf16.msra.mxu0 %v5106_v25 }
 0x49a   :  { %4394 = vmatprep.subr.bf16.mxu0 %v4993_v3 }
 0x49d   :  { %4396 = vmatpush3.bf16.msra.mxu0 %v5126_v30 }
 0x49e   :  { %4397 = vmatprep.subr.bf16.mxu0 %v4993_v3 }
 0x4a1   :  { %4399 = vmatpush3.bf16.msra.mxu0 %v5146_v35 }
 0x4a2   :  { %4400 = vmatprep.subr.bf16.mxu0 %v4993_v3 }
 0x4a5   :  { %4402 = vmatpush3.bf16.msra.mxu0 %v5166_v40 }
 0x4a6   :  { %4427 = vmatprep.subr.bf16.mxu0 %v4993_v3 }
 0x55b   :  { %v838_v61 = vpop.f32.mrb[32].mxu0 }
 0x55c   :  { %v842_v62 = vadd.f32 %v838_v61, %v244_v60  ;;  %v3395_v63 = vpop.f32.mrb[33].mxu0 }
 0x55e   :  { %4922 = vtanh.f32 %v842_v62 }
 0x568   :  { %v4923_v1 = vpop.eup %4922 }
 0x569   :  { %3429 = vmatmul.mubr.f32.vlgmr.msra.gmra.mrb[6].mxu1 %v4923_v1 }
 0x56a   :  { %4405 = vmatpush3.bf16.msra.mxu1 %v5043_v4  ;;  %3498 = vmatprep.mubr.msk.f32.mxu1 %vm4994_vm1, %v4995_v6 }
 0x56b   :  { %4406 = vmatprep.subr.bf16.mxu1 %v4993_v3 }
 0x56e   :  { %4408 = vmatpush3.bf16.msra.mxu1 %v5051_v7 }
 0x56f   :  { %4409 = vmatprep.subr.bf16.mxu1 %v4993_v3 }
 0x572   :  { %4411 = vmatpush3.bf16.msra.mxu1 %v5077_v17 }
 0x573   :  { %4412 = vmatprep.subr.bf16.mxu1 %v4993_v3 }
 0x576   :  { %4414 = vmatpush3.bf16.msra.mxu1 %v5088_v20 }
 0x577   :  { %4415 = vmatprep.subr.bf16.mxu1 %v4993_v3 }
 0x57a   :  { %4417 = vmatpush3.bf16.msra.mxu1 %v5106_v25 }
 0x57b   :  { %4418 = vmatprep.subr.bf16.mxu1 %v4993_v3 }
 0x57e   :  { %4420 = vmatpush3.bf16.msra.mxu1 %v5126_v30 }
 0x57f   :  { %4421 = vmatprep.subr.bf16.mxu1 %v4993_v3 }
 0x582   :  { %4423 = vmatpush3.bf16.msra.mxu1 %v5146_v35 }
 0x583   :  { %4424 = vmatprep.subr.bf16.mxu1 %v4993_v3 }
 0x586   :  { %4426 = vmatpush3.bf16.msra.mxu1 %v5166_v40 }
 0x587   :  { %4451 = vmatprep.subr.bf16.mxu1 %v4993_v3 }
 0x63c   :  { %v912_v10 = vpop.f32.mrb[6].mxu1 }
 0x63d   :  { %v916_v12 = vadd.f32 %v912_v10, %v249_v0  ;;  %v3430_v14 = vpop.f32.mrb[7].mxu1 }
 0x63f   :  { %4924 = vtanh.f32 %v916_v12 }
 0x649   :  { %v4925_v15 = vpop.eup %4924 }
 0x64a   :  { %3464 = vmatmul.mubr.f32.vlgmr.msra.gmra.mrb[34].mxu0 %v4925_v15 }
 0x64b   :  { %4429 = vmatpush3.bf16.msra.mxu0 %v5043_v4  ;;  %3533 = vmatprep.mubr.msk.f32.mxu0 %vm4994_vm1, %v4995_v6 }
 0x64c   :  { %4430 = vmatprep.subr.bf16.mxu0 %v4993_v3 }
 0x64f   :  { %4432 = vmatpush3.bf16.msra.mxu0 %v5051_v7 }
 0x650   :  { %4433 = vmatprep.subr.bf16.mxu0 %v4993_v3 }
 0x653   :  { %4435 = vmatpush3.bf16.msra.mxu0 %v5077_v17 }
 0x654   :  { %4436 = vmatprep.subr.bf16.mxu0 %v4993_v3 }
 0x657   :  { %4438 = vmatpush3.bf16.msra.mxu0 %v5088_v20 }
 0x658   :  { %4439 = vmatprep.subr.bf16.mxu0 %v4993_v3 }
 0x65b   :  { %4441 = vmatpush3.bf16.msra.mxu0 %v5106_v25 }
 0x65c   :  { %4442 = vmatprep.subr.bf16.mxu0 %v4993_v3 }
 0x65f   :  { %4444 = vmatpush3.bf16.msra.mxu0 %v5126_v30 }
 0x660   :  { %4445 = vmatprep.subr.bf16.mxu0 %v4993_v3 }
 0x663   :  { %4447 = vmatpush3.bf16.msra.mxu0 %v5146_v35 }
 0x664   :  { %4448 = vmatprep.subr.bf16.mxu0 %v4993_v3 }
 0x667   :  { %4450 = vmatpush3.bf16.msra.mxu0 %v5166_v40 }
 0x668   :  { %4475 = vmatprep.subr.bf16.mxu0 %v4993_v3 }
 0x71d   :  { %v986_v24 = vpop.f32.mrb[34].mxu0 }
 0x71e   :  { %v990_v39 = vadd.f32 %v986_v24, %v254_v5  ;;  %v3465_v41 = vpop.f32.mrb[35].mxu0 }
 0x720   :  { %4926 = vtanh.f32 %v990_v39 }
 0x72a   :  { %v4927_v42 = vpop.eup %4926 }
 0x72b   :  { %3499 = vmatmul.mubr.f32.vlgmr.msra.gmra.mrb[8].mxu1 %v4927_v42 }
 0x72c   :  { %4453 = vmatpush3.bf16.msra.mxu1 %v5043_v4  ;;  %3568 = vmatprep.mubr.msk.f32.mxu1 %vm4994_vm1, %v4995_v6 }
 0x72d   :  { %4454 = vmatprep.subr.bf16.mxu1 %v4993_v3 }
 0x730   :  { %4456 = vmatpush3.bf16.msra.mxu1 %v5051_v7 }
 0x731   :  { %4457 = vmatprep.subr.bf16.mxu1 %v4993_v3 }
 0x734   :  { %4459 = vmatpush3.bf16.msra.mxu1 %v5077_v17 }
 0x735   :  { %4460 = vmatprep.subr.bf16.mxu1 %v4993_v3 }
 0x738   :  { %4462 = vmatpush3.bf16.msra.mxu1 %v5088_v20 }
 0x739   :  { %4463 = vmatprep.subr.bf16.mxu1 %v4993_v3 }
 0x73c   :  { %4465 = vmatpush3.bf16.msra.mxu1 %v5106_v25 }
 0x73d   :  { %4466 = vmatprep.subr.bf16.mxu1 %v4993_v3 }
 0x740   :  { %4468 = vmatpush3.bf16.msra.mxu1 %v5126_v30 }
 0x741   :  { %4469 = vmatprep.subr.bf16.mxu1 %v4993_v3 }
 0x744   :  { %4471 = vmatpush3.bf16.msra.mxu1 %v5146_v35 }
 0x745   :  { %4472 = vmatprep.subr.bf16.mxu1 %v4993_v3 }
 0x748   :  { %4474 = vmatpush3.bf16.msra.mxu1 %v5166_v40 }
 0x749   :  { %4499 = vmatprep.subr.bf16.mxu1 %v4993_v3 }
 0x7fe   :  { %v1060_v43 = vpop.f32.mrb[8].mxu1 }
 0x7ff   :  { %v1064_v44 = vadd.f32 %v1060_v43, %v259_v2  ;;  %v3500_v45 = vpop.f32.mrb[9].mxu1 }
 0x801   :  { %4928 = vtanh.f32 %v1064_v44 }
 0x80b   :  { %v4929_v46 = vpop.eup %4928 }
 0x80c   :  { %3534 = vmatmul.mubr.f32.vlgmr.msra.gmra.mrb[36].mxu0 %v4929_v46 }
 0x80d   :  { %4477 = vmatpush3.bf16.msra.mxu0 %v5043_v4  ;;  %3603 = vmatprep.mubr.msk.f32.mxu0 %vm4994_vm1, %v4995_v6 }
 0x80e   :  { %4478 = vmatprep.subr.bf16.mxu0 %v4993_v3 }
 0x811   :  { %4480 = vmatpush3.bf16.msra.mxu0 %v5051_v7 }
 0x812   :  { %4481 = vmatprep.subr.bf16.mxu0 %v4993_v3 }
 0x815   :  { %4483 = vmatpush3.bf16.msra.mxu0 %v5077_v17 }
 0x816   :  { %4484 = vmatprep.subr.bf16.mxu0 %v4993_v3 }
 0x819   :  { %4486 = vmatpush3.bf16.msra.mxu0 %v5088_v20 }
 0x81a   :  { %4487 = vmatprep.subr.bf16.mxu0 %v4993_v3 }
 0x81d   :  { %4489 = vmatpush3.bf16.msra.mxu0 %v5106_v25 }
 0x81e   :  { %4490 = vmatprep.subr.bf16.mxu0 %v4993_v3 }
 0x821   :  { %4492 = vmatpush3.bf16.msra.mxu0 %v5126_v30 }
 0x822   :  { %4493 = vmatprep.subr.bf16.mxu0 %v4993_v3 }
 0x825   :  { %4495 = vmatpush3.bf16.msra.mxu0 %v5146_v35 }
 0x826   :  { %4496 = vmatprep.subr.bf16.mxu0 %v4993_v3 }
 0x829   :  { %4498 = vmatpush3.bf16.msra.mxu0 %v5166_v40 }
 0x82a   :  { %4523 = vmatprep.subr.bf16.mxu0 %v4993_v3 }
 0x8df   :  { %v1134_v47 = vpop.f32.mrb[36].mxu0 }
 0x8e0   :  { %v1138_v48 = vadd.f32 %v1134_v47, %v264_v11  ;;  %v3535_v49 = vpop.f32.mrb[37].mxu0 }
 0x8e2   :  { %4930 = vtanh.f32 %v1138_v48 }
 0x8ec   :  { %v4931_v50 = vpop.eup %4930 }
 0x8ed   :  { %3569 = vmatmul.mubr.f32.vlgmr.msra.gmra.mrb[10].mxu1 %v4931_v50 }
 0x8ee   :  { %4501 = vmatpush3.bf16.msra.mxu1 %v5043_v4  ;;  %3638 = vmatprep.mubr.msk.f32.mxu1 %vm4994_vm1, %v4995_v6 }
 0x8ef   :  { %4502 = vmatprep.subr.bf16.mxu1 %v4993_v3 }
 0x8f2   :  { %4504 = vmatpush3.bf16.msra.mxu1 %v5051_v7 }
 0x8f3   :  { %4505 = vmatprep.subr.bf16.mxu1 %v4993_v3 }
 0x8f6   :  { %4507 = vmatpush3.bf16.msra.mxu1 %v5077_v17 }
 0x8f7   :  { %4508 = vmatprep.subr.bf16.mxu1 %v4993_v3 }
 0x8fa   :  { %4510 = vmatpush3.bf16.msra.mxu1 %v5088_v20 }
 0x8fb   :  { %4511 = vmatprep.subr.bf16.mxu1 %v4993_v3 }
 0x8fe   :  { %4513 = vmatpush3.bf16.msra.mxu1 %v5106_v25 }
 0x8ff   :  { %4514 = vmatprep.subr.bf16.mxu1 %v4993_v3 }
 0x902   :  { %4516 = vmatpush3.bf16.msra.mxu1 %v5126_v30 }
 0x903   :  { %4517 = vmatprep.subr.bf16.mxu1 %v4993_v3 }
 0x906   :  { %4519 = vmatpush3.bf16.msra.mxu1 %v5146_v35 }
 0x907   :  { %4520 = vmatprep.subr.bf16.mxu1 %v4993_v3 }
 0x90a   :  { %4522 = vmatpush3.bf16.msra.mxu1 %v5166_v40 }
 0x90b   :  { %4547 = vmatprep.subr.bf16.mxu1 %v4993_v3 }
 0x9c0   :  { %v1208_v51 = vpop.f32.mrb[10].mxu1 }
 0x9c1   :  { %v1212_v52 = vadd.f32 %v1208_v51, %v269_v9  ;;  %v3570_v53 = vpop.f32.mrb[11].mxu1 }
 0x9c3   :  { %4932 = vtanh.f32 %v1212_v52 }
 0x9cd   :  { %v4933_v54 = vpop.eup %4932 }
 0x9ce   :  { %3604 = vmatmul.mubr.f32.vlgmr.msra.gmra.mrb[38].mxu0 %v4933_v54 }
 0x9cf   :  { %4525 = vmatpush3.bf16.msra.mxu0 %v5043_v4  ;;  %3673 = vmatprep.mubr.msk.f32.mxu0 %vm4994_vm1, %v4995_v6 }
 0x9d0   :  { %4526 = vmatprep.subr.bf16.mxu0 %v4993_v3 }
 0x9d3   :  { %4528 = vmatpush3.bf16.msra.mxu0 %v5051_v7 }
 0x9d4   :  { %4529 = vmatprep.subr.bf16.mxu0 %v4993_v3 }
 0x9d7   :  { %4531 = vmatpush3.bf16.msra.mxu0 %v5077_v17 }
 0x9d8   :  { %4532 = vmatprep.subr.bf16.mxu0 %v4993_v3 }
 0x9db   :  { %4534 = vmatpush3.bf16.msra.mxu0 %v5088_v20 }
 0x9dc   :  { %4535 = vmatprep.subr.bf16.mxu0 %v4993_v3 }
 0x9df   :  { %4537 = vmatpush3.bf16.msra.mxu0 %v5106_v25 }
 0x9e0   :  { %4538 = vmatprep.subr.bf16.mxu0 %v4993_v3 }
 0x9e3   :  { %4540 = vmatpush3.bf16.msra.mxu0 %v5126_v30 }
 0x9e4   :  { %4541 = vmatprep.subr.bf16.mxu0 %v4993_v3 }
 0x9e7   :  { %4543 = vmatpush3.bf16.msra.mxu0 %v5146_v35 }
 0x9e8   :  { %4544 = vmatprep.subr.bf16.mxu0 %v4993_v3 }
 0x9eb   :  { %4546 = vmatpush3.bf16.msra.mxu0 %v5166_v40 }
 0x9ec   :  { %4571 = vmatprep.subr.bf16.mxu0 %v4993_v3 }
 0xaa1   :  { %v1282_v55 = vpop.f32.mrb[38].mxu0 }
 0xaa2   :  { %v1286_v56 = vadd.f32 %v1282_v55, %v274_v16  ;;  %v3605_v57 = vpop.f32.mrb[39].mxu0 }
 0xaa4   :  { %4934 = vtanh.f32 %v1286_v56 }
 0xaae   :  { %v4935_v58 = vpop.eup %4934 }
 0xaaf   :  { %3639 = vmatmul.mubr.f32.vlgmr.msra.gmra.mrb[12].mxu1 %v4935_v58 }
 0xab0   :  { %4549 = vmatpush3.bf16.msra.mxu1 %v5043_v4  ;;  %3708 = vmatprep.mubr.msk.f32.mxu1 %vm4994_vm1, %v4995_v6 }
 0xab1   :  { %4550 = vmatprep.subr.bf16.mxu1 %v4993_v3 }
 0xab4   :  { %4552 = vmatpush3.bf16.msra.mxu1 %v5051_v7 }
 0xab5   :  { %4553 = vmatprep.subr.bf16.mxu1 %v4993_v3 }
 0xab8   :  { %4555 = vmatpush3.bf16.msra.mxu1 %v5077_v17 }
 0xab9   :  { %4556 = vmatprep.subr.bf16.mxu1 %v4993_v3 }
 0xabc   :  { %4558 = vmatpush3.bf16.msra.mxu1 %v5088_v20 }
 0xabd   :  { %4559 = vmatprep.subr.bf16.mxu1 %v4993_v3 }
 0xac0   :  { %4561 = vmatpush3.bf16.msra.mxu1 %v5106_v25 }
 0xac1   :  { %4562 = vmatprep.subr.bf16.mxu1 %v4993_v3 }
 0xac4   :  { %4564 = vmatpush3.bf16.msra.mxu1 %v5126_v30 }
 0xac5   :  { %4565 = vmatprep.subr.bf16.mxu1 %v4993_v3 }
 0xac8   :  { %4567 = vmatpush3.bf16.msra.mxu1 %v5146_v35 }
 0xac9   :  { %4568 = vmatprep.subr.bf16.mxu1 %v4993_v3 }
 0xacc   :  { %4570 = vmatpush3.bf16.msra.mxu1 %v5166_v40 }
 0xacd   :  { %4595 = vmatprep.subr.bf16.mxu1 %v4993_v3 }
 0xb82   :  { %v1356_v59 = vpop.f32.mrb[12].mxu1 }
 0xb83   :  { %v1360_v60 = vadd.f32 %v1356_v59, %v279_v13  ;;  %v3640_v61 = vpop.f32.mrb[13].mxu1 }
 0xb85   :  { %4936 = vtanh.f32 %v1360_v60 }
 0xb8f   :  { %v4937_v62 = vpop.eup %4936 }
 0xb90   :  { %3674 = vmatmul.mubr.f32.vlgmr.msra.gmra.mrb[40].mxu0 %v4937_v62 }
 0xb91   :  { %4573 = vmatpush3.bf16.msra.mxu0 %v5043_v4  ;;  %3743 = vmatprep.mubr.msk.f32.mxu0 %vm4994_vm1, %v4995_v6 }
 0xb92   :  { %4574 = vmatprep.subr.bf16.mxu0 %v4993_v3 }
 0xb95   :  { %4576 = vmatpush3.bf16.msra.mxu0 %v5051_v7 }
 0xb96   :  { %4577 = vmatprep.subr.bf16.mxu0 %v4993_v3 }
 0xb99   :  { %4579 = vmatpush3.bf16.msra.mxu0 %v5077_v17 }
 0xb9a   :  { %4580 = vmatprep.subr.bf16.mxu0 %v4993_v3 }
 0xb9d   :  { %4582 = vmatpush3.bf16.msra.mxu0 %v5088_v20 }
 0xb9e   :  { %4583 = vmatprep.subr.bf16.mxu0 %v4993_v3 }
 0xba1   :  { %4585 = vmatpush3.bf16.msra.mxu0 %v5106_v25 }
 0xba2   :  { %4586 = vmatprep.subr.bf16.mxu0 %v4993_v3 }
 0xba5   :  { %4588 = vmatpush3.bf16.msra.mxu0 %v5126_v30 }
 0xba6   :  { %4589 = vmatprep.subr.bf16.mxu0 %v4993_v3 }
 0xba9   :  { %4591 = vmatpush3.bf16.msra.mxu0 %v5146_v35 }
 0xbaa   :  { %4592 = vmatprep.subr.bf16.mxu0 %v4993_v3 }
 0xbad   :  { %4594 = vmatpush3.bf16.msra.mxu0 %v5166_v40 }
 0xbae   :  { %4619 = vmatprep.subr.bf16.mxu0 %v4993_v3 }
 0xc63   :  { %v1430_v63 = vpop.f32.mrb[40].mxu0 }
 0xc64   :  { %v1434_v1 = vadd.f32 %v1430_v63, %v284_v19  ;;  %v3675_v0 = vpop.f32.mrb[41].mxu0 }
 0xc66   :  { %4938 = vtanh.f32 %v1434_v1 }
 0xc70   :  { %v4939_v10 = vpop.eup %4938 }
 0xc71   :  { %3709 = vmatmul.mubr.f32.vlgmr.msra.gmra.mrb[14].mxu1 %v4939_v10 }
 0xc72   :  { %4597 = vmatpush3.bf16.msra.mxu1 %v5043_v4  ;;  %3778 = vmatprep.mubr.msk.f32.mxu1 %vm4994_vm1, %v4995_v6 }
 0xc73   :  { %4598 = vmatprep.subr.bf16.mxu1 %v4993_v3 }
 0xc76   :  { %4600 = vmatpush3.bf16.msra.mxu1 %v5051_v7 }
 0xc77   :  { %4601 = vmatprep.subr.bf16.mxu1 %v4993_v3 }
 0xc7a   :  { %4603 = vmatpush3.bf16.msra.mxu1 %v5077_v17 }
 0xc7b   :  { %4604 = vmatprep.subr.bf16.mxu1 %v4993_v3 }
 0xc7e   :  { %4606 = vmatpush3.bf16.msra.mxu1 %v5088_v20 }
 0xc7f   :  { %4607 = vmatprep.subr.bf16.mxu1 %v4993_v3 }
 0xc82   :  { %4609 = vmatpush3.bf16.msra.mxu1 %v5106_v25 }
 0xc83   :  { %4610 = vmatprep.subr.bf16.mxu1 %v4993_v3 }
 0xc86   :  { %4612 = vmatpush3.bf16.msra.mxu1 %v5126_v30 }
 0xc87   :  { %4613 = vmatprep.subr.bf16.mxu1 %v4993_v3 }
 0xc8a   :  { %4615 = vmatpush3.bf16.msra.mxu1 %v5146_v35 }
 0xc8b   :  { %4616 = vmatprep.subr.bf16.mxu1 %v4993_v3 }
 0xc8e   :  { %4618 = vmatpush3.bf16.msra.mxu1 %v5166_v40 }
 0xc8f   :  { %4643 = vmatprep.subr.bf16.mxu1 %v4993_v3 }
 0xd44   :  { %v1504_v12 = vpop.f32.mrb[14].mxu1 }
 0xd45   :  { %v1508_v14 = vadd.f32 %v1504_v12, %v289_v18  ;;  %v3710_v15 = vpop.f32.mrb[15].mxu1 }
 0xd47   :  { %4940 = vtanh.f32 %v1508_v14 }
 0xd51   :  { %v4941_v5 = vpop.eup %4940 }
 0xd52   :  { %3744 = vmatmul.mubr.f32.vlgmr.msra.gmra.mrb[42].mxu0 %v4941_v5 }
 0xd53   :  { %4621 = vmatpush3.bf16.msra.mxu0 %v5043_v4  ;;  %3813 = vmatprep.mubr.msk.f32.mxu0 %vm4994_vm1, %v4995_v6 }
 0xd54   :  { %4622 = vmatprep.subr.bf16.mxu0 %v4993_v3 }
 0xd57   :  { %4624 = vmatpush3.bf16.msra.mxu0 %v5051_v7 }
 0xd58   :  { %4625 = vmatprep.subr.bf16.mxu0 %v4993_v3 }
 0xd5b   :  { %4627 = vmatpush3.bf16.msra.mxu0 %v5077_v17 }
 0xd5c   :  { %4628 = vmatprep.subr.bf16.mxu0 %v4993_v3 }
 0xd5f   :  { %4630 = vmatpush3.bf16.msra.mxu0 %v5088_v20 }
 0xd60   :  { %4631 = vmatprep.subr.bf16.mxu0 %v4993_v3 }
 0xd63   :  { %4633 = vmatpush3.bf16.msra.mxu0 %v5106_v25 }
 0xd64   :  { %4634 = vmatprep.subr.bf16.mxu0 %v4993_v3 }
 0xd67   :  { %4636 = vmatpush3.bf16.msra.mxu0 %v5126_v30 }
 0xd68   :  { %4637 = vmatprep.subr.bf16.mxu0 %v4993_v3 }
 0xd6b   :  { %4639 = vmatpush3.bf16.msra.mxu0 %v5146_v35 }
 0xd6c   :  { %4640 = vmatprep.subr.bf16.mxu0 %v4993_v3 }
 0xd6f   :  { %4642 = vmatpush3.bf16.msra.mxu0 %v5166_v40 }
 0xd70   :  { %4667 = vmatprep.subr.bf16.mxu0 %v4993_v3 }
 0xe25   :  { %v1578_v24 = vpop.f32.mrb[42].mxu0 }
 0xe26   :  { %v1582_v39 = vadd.f32 %v1578_v24, %v294_v22  ;;  %v3745_v41 = vpop.f32.mrb[43].mxu0 }
 0xe28   :  { %4942 = vtanh.f32 %v1582_v39  ;;  %v2477_v39 = vld [vmem:[%s5920_s4 + $0x28] sm:$0xff] }
 0xe32   :  { %v4943_v42 = vpop.eup %4942 }
 0xe33   :  { %3779 = vmatmul.mubr.f32.vlgmr.msra.gmra.mrb[16].mxu1 %v4943_v42  ;;  %v2478_v42 = vld [vmem:[%s5920_s4 + $0x30] sm:$0xff] }
 0xe34   :  { %4645 = vmatpush3.bf16.msra.mxu1 %v5043_v4  ;;  %3848 = vmatprep.mubr.msk.f32.mxu1 %vm4994_vm1, %v4995_v6 }
 0xe35   :  { %4646 = vmatprep.subr.bf16.mxu1 %v4993_v3 }
 0xe38   :  { %4648 = vmatpush3.bf16.msra.mxu1 %v5051_v7 }
 0xe39   :  { %4649 = vmatprep.subr.bf16.mxu1 %v4993_v3 }
 0xe3c   :  { %4651 = vmatpush3.bf16.msra.mxu1 %v5077_v17 }
 0xe3d   :  { %4652 = vmatprep.subr.bf16.mxu1 %v4993_v3 }
 0xe40   :  { %4654 = vmatpush3.bf16.msra.mxu1 %v5088_v20 }
 0xe41   :  { %4655 = vmatprep.subr.bf16.mxu1 %v4993_v3 }
 0xe44   :  { %4657 = vmatpush3.bf16.msra.mxu1 %v5106_v25 }
 0xe45   :  { %4658 = vmatprep.subr.bf16.mxu1 %v4993_v3 }
 0xe48   :  { %4660 = vmatpush3.bf16.msra.mxu1 %v5126_v30 }
 0xe49   :  { %4661 = vmatprep.subr.bf16.mxu1 %v4993_v3 }
 0xe4c   :  { %4663 = vmatpush3.bf16.msra.mxu1 %v5146_v35 }
 0xe4d   :  { %4664 = vmatprep.subr.bf16.mxu1 %v4993_v3 }
 0xe50   :  { %4666 = vmatpush3.bf16.msra.mxu1 %v5166_v40 }
 0xe51   :  { %4691 = vmatprep.subr.bf16.mxu1 %v4993_v3 }
 0xf06   :  { %v1652_v2 = vpop.f32.mrb[16].mxu1 }
 0xf07   :  { %v1656_v43 = vadd.f32 %v1652_v2, %v299_v21  ;;  %v3780_v44 = vpop.f32.mrb[17].mxu1  ;;  %v2479_v21 = vld [vmem:[%s5920_s4 + $0x38] sm:$0xff] }
 0xf08   :  { %v4893_v2 = vpack.c.bf16 %v2479_v21, %v2478_v42  ;;  %v2481_v44 = vld [vmem:[%s5920_s4 + $0x48] sm:$0xff] }
 0xf09   :  { %4944 = vtanh.f32 %v1656_v43  ;;  %v2480_v43 = vld [vmem:[%s5920_s4 + $0x40] sm:$0xff] }
 0xf13   :  { %v4945_v45 = vpop.eup %4944 }
 0xf14   :  { %3814 = vmatmul.mubr.f32.vlgmr.msra.gmra.mrb[44].mxu0 %v4945_v45  ;;  %v4896_v45 = vpack.c.bf16 %v2481_v44, %v2480_v43 }
 0xf15   :  { %4669 = vmatpush3.bf16.msra.mxu0 %v5043_v4  ;;  %3883 = vmatprep.mubr.msk.f32.mxu0 %vm4994_vm1, %v4995_v6 }
 0xf16   :  { %4670 = vmatprep.subr.bf16.mxu0 %v4993_v3 }
 0xf19   :  { %4672 = vmatpush3.bf16.msra.mxu0 %v5051_v7 }
 0xf1a   :  { %4673 = vmatprep.subr.bf16.mxu0 %v4993_v3 }
 0xf1d   :  { %4675 = vmatpush3.bf16.msra.mxu0 %v5077_v17 }
 0xf1e   :  { %4676 = vmatprep.subr.bf16.mxu0 %v4993_v3 }
 0xf21   :  { %4678 = vmatpush3.bf16.msra.mxu0 %v5088_v20 }
 0xf22   :  { %4679 = vmatprep.subr.bf16.mxu0 %v4993_v3 }
 0xf25   :  { %4681 = vmatpush3.bf16.msra.mxu0 %v5106_v25 }
 0xf26   :  { %4682 = vmatprep.subr.bf16.mxu0 %v4993_v3 }
 0xf29   :  { %4684 = vmatpush3.bf16.msra.mxu0 %v5126_v30 }
 0xf2a   :  { %4685 = vmatprep.subr.bf16.mxu0 %v4993_v3 }
 0xf2d   :  { %4687 = vmatpush3.bf16.msra.mxu0 %v5146_v35 }
 0xf2e   :  { %4688 = vmatprep.subr.bf16.mxu0 %v4993_v3 }
 0xf31   :  { %4690 = vmatpush3.bf16.msra.mxu0 %v5166_v40 }
 0xf32   :  { %4715 = vmatprep.subr.bf16.mxu0 %v4993_v3 }
 0xfe7   :  { %v1726_v46 = vpop.f32.mrb[44].mxu0 }
 0xfe8   :  { %v1730_v11 = vadd.f32 %v1726_v46, %v304_v26  ;;  %v3815_v47 = vpop.f32.mrb[45].mxu0  ;;  %v349_v26 = vadd.f32 %v5757_v8, %v5353_v38  ;;  %v2484_v38 = vld [vmem:[%s5920_s4 + $0x60] sm:$0xff] }
 0xfea   :  { %4946 = vtanh.f32 %v1730_v11 }
 0xff4   :  { %v4947_v48 = vpop.eup %4946 }
 0xff5   :  { %3849 = vmatmul.mubr.f32.vlgmr.msra.gmra.mrb[18].mxu1 %v4947_v48 }
 0xff6   :  { %4693 = vmatpush3.bf16.msra.mxu1 %v5043_v4  ;;  %3918 = vmatprep.mubr.msk.f32.mxu1 %vm4994_vm1, %v4995_v6 }
 0xff7   :  { %4694 = vmatprep.subr.bf16.mxu1 %v4993_v3 }
 0xffa   :  { %4696 = vmatpush3.bf16.msra.mxu1 %v5051_v7 }
 0xffb   :  { %4697 = vmatprep.subr.bf16.mxu1 %v4993_v3 }
 0xffe   :  { %4699 = vmatpush3.bf16.msra.mxu1 %v5077_v17 }
 0xfff   :  { %4700 = vmatprep.subr.bf16.mxu1 %v4993_v3 }
0x1002   :  { %4702 = vmatpush3.bf16.msra.mxu1 %v5088_v20 }
0x1003   :  { %4703 = vmatprep.subr.bf16.mxu1 %v4993_v3 }
0x1006   :  { %4705 = vmatpush3.bf16.msra.mxu1 %v5106_v25 }
0x1007   :  { %4706 = vmatprep.subr.bf16.mxu1 %v4993_v3 }
0x100a   :  { %4708 = vmatpush3.bf16.msra.mxu1 %v5126_v30 }
0x100b   :  { %4709 = vmatprep.subr.bf16.mxu1 %v4993_v3 }
0x100e   :  { %4711 = vmatpush3.bf16.msra.mxu1 %v5146_v35 }
0x100f   :  { %4712 = vmatprep.subr.bf16.mxu1 %v4993_v3 }
0x1012   :  { %4714 = vmatpush3.bf16.msra.mxu1 %v5166_v40 }
0x1013   :  { %4739 = vmatprep.subr.bf16.mxu1 %v4993_v3 }
0x10c8   :  { %v1800_v49 = vpop.f32.mrb[18].mxu1 }
0x10c9   :  { %v1804_v50 = vadd.f32 %v1800_v49, %v309_v23  ;;  %v3850_v9 = vpop.f32.mrb[19].mxu1  ;;  %v2482_v23 = vld [vmem:[%s5920_s4 + $0x50] sm:$0xff]  ;;  %v2483_v49 = vld [vmem:[%s5920_s4 + $0x58] sm:$0xff] }
0x10ca   :  { %v2485_v9 = vld [vmem:[%s5920_s4 + $0x68] sm:$0xff] }
0x10cb   :  { %4948 = vtanh.f32 %v1804_v50  ;;  %v4899_v50 = vpack.c.bf16 %v2483_v49, %v2482_v23 }
0x10d5   :  { %v4949_v51 = vpop.eup %4948 }
0x10d6   :  { %3884 = vmatmul.mubr.f32.vlgmr.msra.gmra.mrb[46].mxu0 %v4949_v51  ;;  %v4902_v51 = vpack.c.bf16 %v2485_v9, %v2484_v38 }
0x10d7   :  { %4717 = vmatpush3.bf16.msra.mxu0 %v5043_v4  ;;  %3953 = vmatprep.mubr.msk.f32.mxu0 %vm4994_vm1, %v4995_v6 }
0x10d8   :  { %4718 = vmatprep.subr.bf16.mxu0 %v4993_v3 }
0x10db   :  { %4720 = vmatpush3.bf16.msra.mxu0 %v5051_v7 }
0x10dc   :  { %4721 = vmatprep.subr.bf16.mxu0 %v4993_v3 }
0x10df   :  { %4723 = vmatpush3.bf16.msra.mxu0 %v5077_v17 }
0x10e0   :  { %4724 = vmatprep.subr.bf16.mxu0 %v4993_v3 }
0x10e3   :  { %4726 = vmatpush3.bf16.msra.mxu0 %v5088_v20 }
0x10e4   :  { %4727 = vmatprep.subr.bf16.mxu0 %v4993_v3 }
0x10e7   :  { %4729 = vmatpush3.bf16.msra.mxu0 %v5106_v25 }
0x10e8   :  { %4730 = vmatprep.subr.bf16.mxu0 %v4993_v3 }
0x10eb   :  { %4732 = vmatpush3.bf16.msra.mxu0 %v5126_v30 }
0x10ec   :  { %4733 = vmatprep.subr.bf16.mxu0 %v4993_v3 }
0x10ef   :  { %4735 = vmatpush3.bf16.msra.mxu0 %v5146_v35 }
0x10f0   :  { %4736 = vmatprep.subr.bf16.mxu0 %v4993_v3 }
0x10f3   :  { %4738 = vmatpush3.bf16.msra.mxu0 %v5166_v40 }
0x10f4   :  { %4763 = vmatprep.subr.bf16.mxu0 %v4993_v3 }
0x11a9   :  { %v1874_v52 = vpop.f32.mrb[46].mxu0 }
0x11aa   :  { %v1878_v53 = vadd.f32 %v1874_v52, %v314_v28  ;;  %v3885_v54 = vpop.f32.mrb[47].mxu0  ;;  %v2486_v28 = vld [vmem:[%s5920_s4 + $0x70] sm:$0xff]  ;;  %v2487_v52 = vld [vmem:[%s5920_s4 + $0x78] sm:$0xff] }
0x11ab   :  { %v354_v54 = vadd.f32 %v5757_v8, %v5351_v37 }
0x11ac   :  { %4950 = vtanh.f32 %v1878_v53  ;;  %v4905_v53 = vpack.c.bf16 %v2487_v52, %v2486_v28 }
0x11b6   :  { %v4951_v16 = vpop.eup %4950 }
0x11b7   :  { %3919 = vmatmul.mubr.f32.vlgmr.msra.gmra.mrb[20].mxu1 %v4951_v16 }
0x11b8   :  { %4741 = vmatpush3.bf16.msra.mxu1 %v5043_v4  ;;  %3988 = vmatprep.mubr.msk.f32.mxu1 %vm4994_vm1, %v4995_v6 }
0x11b9   :  { %4742 = vmatprep.subr.bf16.mxu1 %v4993_v3 }
0x11bc   :  { %4744 = vmatpush3.bf16.msra.mxu1 %v5051_v7 }
0x11bd   :  { %4745 = vmatprep.subr.bf16.mxu1 %v4993_v3 }
0x11c0   :  { %4747 = vmatpush3.bf16.msra.mxu1 %v5077_v17 }
0x11c1   :  { %4748 = vmatprep.subr.bf16.mxu1 %v4993_v3 }
0x11c4   :  { %4750 = vmatpush3.bf16.msra.mxu1 %v5088_v20 }
0x11c5   :  { %4751 = vmatprep.subr.bf16.mxu1 %v4993_v3 }
0x11c8   :  { %4753 = vmatpush3.bf16.msra.mxu1 %v5106_v25 }
0x11c9   :  { %4754 = vmatprep.subr.bf16.mxu1 %v4993_v3 }
0x11cc   :  { %4756 = vmatpush3.bf16.msra.mxu1 %v5126_v30 }
0x11cd   :  { %4757 = vmatprep.subr.bf16.mxu1 %v4993_v3 }
0x11d0   :  { %4759 = vmatpush3.bf16.msra.mxu1 %v5146_v35 }
0x11d1   :  { %4760 = vmatprep.subr.bf16.mxu1 %v4993_v3 }
0x11d4   :  { %4762 = vmatpush3.bf16.msra.mxu1 %v5166_v40 }
0x11d5   :  { %4787 = vmatprep.subr.bf16.mxu1 %v4993_v3 }
0x128a   :  { %v1948_v55 = vpop.f32.mrb[20].mxu1 }
0x128b   :  { %v1952_v56 = vadd.f32 %v1948_v55, %v319_v27  ;;  %v3920_v57 = vpop.f32.mrb[21].mxu1 }
0x128c   :  { %v2610_v57 = vld [vmem:[%s5921_s5] ss:$0 sm:$0xff] }
0x128d   :  { %4952 = vtanh.f32 %v1952_v56 }
0x1297   :  { %v4953_v58 = vpop.eup %4952 }
0x1298   :  { %3954 = vmatmul.mubr.f32.vlgmr.msra.gmra.mrb[48].mxu0 %v4953_v58 }
0x1299   :  { %4765 = vmatpush3.bf16.msra.mxu0 %v5043_v4  ;;  %4023 = vmatprep.mubr.msk.f32.mxu0 %vm4994_vm1, %v4995_v6 }
0x129a   :  { %4766 = vmatprep.subr.bf16.mxu0 %v4993_v3 }
0x129d   :  { %4768 = vmatpush3.bf16.msra.mxu0 %v5051_v7 }
0x129e   :  { %4769 = vmatprep.subr.bf16.mxu0 %v4993_v3 }
0x12a1   :  { %4771 = vmatpush3.bf16.msra.mxu0 %v5077_v17 }
0x12a2   :  { %4772 = vmatprep.subr.bf16.mxu0 %v4993_v3 }
0x12a5   :  { %4774 = vmatpush3.bf16.msra.mxu0 %v5088_v20 }
0x12a6   :  { %4775 = vmatprep.subr.bf16.mxu0 %v4993_v3 }
0x12a9   :  { %4777 = vmatpush3.bf16.msra.mxu0 %v5106_v25 }
0x12aa   :  { %4778 = vmatprep.subr.bf16.mxu0 %v4993_v3 }
0x12ad   :  { %4780 = vmatpush3.bf16.msra.mxu0 %v5126_v30 }
0x12ae   :  { %4781 = vmatprep.subr.bf16.mxu0 %v4993_v3 }
0x12b1   :  { %4783 = vmatpush3.bf16.msra.mxu0 %v5146_v35 }
0x12b2   :  { %4784 = vmatprep.subr.bf16.mxu0 %v4993_v3 }
0x12b5   :  { %4786 = vmatpush3.bf16.msra.mxu0 %v5166_v40 }
0x12b6   :  { %4811 = vmatprep.subr.bf16.mxu0 %v4993_v3 }
0x136b   :  { %v2022_v13 = vpop.f32.mrb[48].mxu0 }
0x136c   :  { %v2026_v59 = vadd.f32 %v2022_v13, %v324_v31  ;;  %v3955_v60 = vpop.f32.mrb[49].mxu0 }
0x136e   :  { %4954 = vtanh.f32 %v2026_v59 }
0x1378   :  { %v4955_v61 = vpop.eup %4954 }
0x1379   :  { %3989 = vmatmul.mubr.f32.vlgmr.msra.gmra.mrb[22].mxu1 %v4955_v61 }
0x137a   :  { %4789 = vmatpush3.bf16.msra.mxu1 %v5043_v4  ;;  %4058 = vmatprep.mubr.msk.f32.mxu1 %vm4994_vm1, %v4995_v6 }
0x137b   :  { %4790 = vmatprep.subr.bf16.mxu1 %v4993_v3 }
0x137e   :  { %4792 = vmatpush3.bf16.msra.mxu1 %v5051_v7 }
0x137f   :  { %4793 = vmatprep.subr.bf16.mxu1 %v4993_v3 }
0x1382   :  { %4795 = vmatpush3.bf16.msra.mxu1 %v5077_v17 }
0x1383   :  { %4796 = vmatprep.subr.bf16.mxu1 %v4993_v3 }
0x1386   :  { %4798 = vmatpush3.bf16.msra.mxu1 %v5088_v20 }
0x1387   :  { %4799 = vmatprep.subr.bf16.mxu1 %v4993_v3 }
0x138a   :  { %4801 = vmatpush3.bf16.msra.mxu1 %v5106_v25 }
0x138b   :  { %4802 = vmatprep.subr.bf16.mxu1 %v4993_v3 }
0x138e   :  { %4804 = vmatpush3.bf16.msra.mxu1 %v5126_v30 }
0x138f   :  { %4805 = vmatprep.subr.bf16.mxu1 %v4993_v3 }
0x1392   :  { %4807 = vmatpush3.bf16.msra.mxu1 %v5146_v35 }
0x1393   :  { %4808 = vmatprep.subr.bf16.mxu1 %v4993_v3 }
0x1396   :  { %4810 = vmatpush3.bf16.msra.mxu1 %v5166_v40 }
0x1397   :  { %4835 = vmatprep.subr.bf16.mxu1 %v4993_v3 }
0x144c   :  { %v2096_v62 = vpop.f32.mrb[22].mxu1 }
0x144d   :  { %v2100_v19 = vadd.f32 %v2096_v62, %v329_v29  ;;  %v3990_v63 = vpop.f32.mrb[23].mxu1 }
0x144f   :  { %4956 = vtanh.f32 %v2100_v19 }
0x1459   :  { %v4957_v1 = vpop.eup %4956 }
0x145a   :  { %4024 = vmatmul.mubr.f32.vlgmr.msra.gmra.mrb[50].mxu0 %v4957_v1 }
0x145b   :  { %4813 = vmatpush3.bf16.msra.mxu0 %v5043_v4  ;;  %4093 = vmatprep.mubr.msk.f32.mxu0 %vm4994_vm1, %v4995_v6 }
0x145c   :  { %4814 = vmatprep.subr.bf16.mxu0 %v4993_v3 }
0x145f   :  { %4816 = vmatpush3.bf16.msra.mxu0 %v5051_v7 }
0x1460   :  { %4817 = vmatprep.subr.bf16.mxu0 %v4993_v3 }
0x1463   :  { %4819 = vmatpush3.bf16.msra.mxu0 %v5077_v17 }
0x1464   :  { %4820 = vmatprep.subr.bf16.mxu0 %v4993_v3 }
0x1467   :  { %4822 = vmatpush3.bf16.msra.mxu0 %v5088_v20 }
0x1468   :  { %4823 = vmatprep.subr.bf16.mxu0 %v4993_v3 }
0x146b   :  { %4825 = vmatpush3.bf16.msra.mxu0 %v5106_v25 }
0x146c   :  { %4826 = vmatprep.subr.bf16.mxu0 %v4993_v3 }
0x146f   :  { %4828 = vmatpush3.bf16.msra.mxu0 %v5126_v30 }
0x1470   :  { %4829 = vmatprep.subr.bf16.mxu0 %v4993_v3 }
0x1473   :  { %4831 = vmatpush3.bf16.msra.mxu0 %v5146_v35 }
0x1474   :  { %4832 = vmatprep.subr.bf16.mxu0 %v4993_v3 }
0x1477   :  { %4834 = vmatpush3.bf16.msra.mxu0 %v5166_v40 }
0x1478   :  { %4859 = vmatprep.subr.bf16.mxu0 %v4993_v3 }
0x152d   :  { %v2170_v0 = vpop.f32.mrb[50].mxu0 }
0x152e   :  { %v2174_v10 = vadd.f32 %v2170_v0, %v334_v33  ;;  %v4025_v18 = vpop.f32.mrb[51].mxu0 }
0x1530   :  { %4958 = vtanh.f32 %v2174_v10 }
0x153a   :  { %v4959_v12 = vpop.eup %4958 }
0x153b   :  { %4059 = vmatmul.mubr.f32.vlgmr.msra.gmra.mrb[24].mxu1 %v4959_v12 }
0x153c   :  { %4837 = vmatpush3.bf16.msra.mxu1 %v5043_v4  ;;  %4128 = vmatprep.mubr.msk.f32.mxu1 %vm4994_vm1, %v4995_v6 }
0x153d   :  { %4838 = vmatprep.subr.bf16.mxu1 %v4993_v3 }
0x1540   :  { %4840 = vmatpush3.bf16.msra.mxu1 %v5051_v7 }
0x1541   :  { %4841 = vmatprep.subr.bf16.mxu1 %v4993_v3 }
0x1544   :  { %4843 = vmatpush3.bf16.msra.mxu1 %v5077_v17 }
0x1545   :  { %4844 = vmatprep.subr.bf16.mxu1 %v4993_v3 }
0x1548   :  { %4846 = vmatpush3.bf16.msra.mxu1 %v5088_v20 }
0x1549   :  { %4847 = vmatprep.subr.bf16.mxu1 %v4993_v3 }
0x154c   :  { %4849 = vmatpush3.bf16.msra.mxu1 %v5106_v25 }
0x154d   :  { %4850 = vmatprep.subr.bf16.mxu1 %v4993_v3 }
0x1550   :  { %4852 = vmatpush3.bf16.msra.mxu1 %v5126_v30 }
0x1551   :  { %4853 = vmatprep.subr.bf16.mxu1 %v4993_v3 }
0x1554   :  { %4855 = vmatpush3.bf16.msra.mxu1 %v5146_v35 }
0x1555   :  { %4856 = vmatprep.subr.bf16.mxu1 %v4993_v3 }
0x1558   :  { %4858 = vmatpush3.bf16.msra.mxu1 %v5166_v40 }
0x1559   :  { %4883 = vmatprep.subr.bf16.mxu1 %v4993_v3 }
0x160e   :  { %v2244_v14 = vpop.f32.mrb[24].mxu1 }
0x160f   :  { %v2248_v15 = vadd.f32 %v2244_v14, %v339_v32  ;;  %v4060_v5 = vpop.f32.mrb[25].mxu1 }
0x1611   :  { %4960 = vtanh.f32 %v2248_v15 }
0x161b   :  { %v4961_v22 = vpop.eup %4960 }
0x161c   :  { %4094 = vmatmul.mubr.f32.vlgmr.msra.gmra.mrb[52].mxu0 %v4961_v22 }
0x161d   :  { %4861 = vmatpush3.bf16.msra.mxu0 %v5043_v4  ;;  %4163 = vmatprep.mubr.msk.f32.mxu0 %vm4994_vm1, %v4995_v6  ;;  %v344_v4 = vadd.f32 %v5757_v8, %v5347_v34 }
0x161e   :  { %4862 = vmatprep.subr.bf16.mxu0 %v4993_v3 }
0x1621   :  { %4864 = vmatpush3.bf16.msra.mxu0 %v5051_v7 }
0x1622   :  { %4865 = vmatprep.subr.bf16.mxu0 %v4993_v3 }
0x1625   :  { %4867 = vmatpush3.bf16.msra.mxu0 %v5077_v17 }
0x1626   :  { %4868 = vmatprep.subr.bf16.mxu0 %v4993_v3 }
0x1629   :  { %4870 = vmatpush3.bf16.msra.mxu0 %v5088_v20 }
0x162a   :  { %4871 = vmatprep.subr.bf16.mxu0 %v4993_v3 }
0x162d   :  { %4873 = vmatpush3.bf16.msra.mxu0 %v5106_v25 }
0x162e   :  { %4874 = vmatprep.subr.bf16.mxu0 %v4993_v3 }
0x1631   :  { %4876 = vmatpush3.bf16.msra.mxu0 %v5126_v30  ;;  %v2472_v30 = vld [vmem:[%s5920_s4] sm:$0xff] }
0x1632   :  { %4877 = vmatprep.subr.bf16.mxu0 %v4993_v3 }
0x1635   :  { %4879 = vmatpush3.bf16.msra.mxu0 %v5146_v35  ;;  %v2473_v35 = vld [vmem:[%s5920_s4 + $0x8] sm:$0xff] }
0x1636   :  { %4880 = vmatprep.subr.bf16.mxu0 %v4993_v3  ;;  %v4884_v34 = vpack.c.bf16 %v2473_v35, %v2472_v30 }
0x1639   :  { %4882 = vmatpush3.bf16.msra.mxu0 %v5166_v40  ;;  %v2474_v40 = vld [vmem:[%s5920_s4 + $0x10] sm:$0xff] }
0x163a   :  { %v4887_v24 = vpack.c.bf16 %v2475_v36, %v2474_v40 }
0x16ef   :  { %v2318_v7 = vpop.f32.mrb[52].mxu0 }
0x16f0   :  { %v2322_v17 = vadd.f32 %v2318_v7, %v344_v4  ;;  %v4095_v20 = vpop.f32.mrb[53].mxu0 }
0x16f2   :  { %4962 = vtanh.f32 %v2322_v17 }
0x16fc   :  { %v4963_v25 = vpop.eup %4962 }
0x16fd   :  { %4129 = vmatmul.mubr.f32.vlgmr.msra.gmra.mrb[26].mxu1 %v4963_v25 }
0x16fe   :  { %4198 = vmatprep.mubr.msk.f32.mxu1 %vm4994_vm1, %v4995_v6  ;;  %4885 = vmatpush3.bf16.msra.mxu1 %v4884_v34  ;;  %v2476_v6 = vld [vmem:[%s5920_s4 + $0x20] sm:$0xff]  ;;  %s2572_s4 = sshll.u32 %s4997_s23, 4  ;;  %s2573_s4 = int_to_ptr.vmem [resolvable:$true] %s2572_s4 }
0x16ff   :  { %4886 = vmatprep.subr.bf16.mxu1 %v4993_v3  ;;  %v4890_v41 = vpack.c.bf16 %v2477_v39, %v2476_v6  ;;  %s4969_s24 = scalar_lea.vmem %s2573_s4, 128  ;;  %p4974_p1 = scmp.lt.s32.totalorder %s2573_s4, %s2573_s4 }
0x1700   :  { %p4970_p0 = scmp.ne.s32.totalorder %s2573_s4, %s4969_s24  ;;  %p4975_p2 = scmp.lt.s32.totalorder %s4969_s24, %s4969_s24 }
0x1702   :  { %4888 = vmatpush3.bf16.msra.mxu1 %v4887_v24  ;;  %p4976_p3 = por %p4975_p2, %p4974_p1 }
0x1703   :  { %4889 = vmatprep.subr.bf16.mxu1 %v4993_v3 }
0x1704   :  { %p4977_p4 = pnand %p4976_p3, %p4970_p0 }
0x1706   :  { %4891 = vmatpush3.bf16.msra.mxu1 %v4890_v41 }
0x1707   :  { %4892 = vmatprep.subr.bf16.mxu1 %v4993_v3 }
0x170a   :  { %4894 = vmatpush3.bf16.msra.mxu1 %v4893_v2 }
0x170b   :  { %4895 = vmatprep.subr.bf16.mxu1 %v4993_v3 }
0x170e   :  { %4897 = vmatpush3.bf16.msra.mxu1 %v4896_v45 }
0x170f   :  { %4898 = vmatprep.subr.bf16.mxu1 %v4993_v3 }
0x1712   :  { %4900 = vmatpush3.bf16.msra.mxu1 %v4899_v50 }
0x1713   :  { %4901 = vmatprep.subr.bf16.mxu1 %v4993_v3 }
0x1716   :  { %4903 = vmatpush3.bf16.msra.mxu1 %v4902_v51 }
0x1717   :  { %4904 = vmatprep.subr.bf16.mxu1 %v4993_v3 }
0x171a   :  { %4906 = vmatpush3.bf16.msra.mxu1 %v4905_v53 }
0x17d0   :  { %v2392_v46 = vpop.f32.mrb[26].mxu1 }
0x17d1   :  { %v2396_v11 = vadd.f32 %v2392_v46, %v349_v26  ;;  %v4130_v47 = vpop.f32.mrb[27].mxu1 }
0x17d3   :  { %4964 = vtanh.f32 %v2396_v11 }
0x17dd   :  { %v4965_v48 = vpop.eup %4964 }
0x17de   :  { %4164 = vmatmul.mubr.f32.vlgmr.msra.gmra.mrb[54].mxu0 %v4965_v48 }
0x18b1   :  { %v2466_v16 = vpop.f32.mrb[54].mxu0 }
0x18b2   :  { %v2470_v27 = vadd.f32 %v2466_v16, %v354_v54  ;;  %v4165_v55 = vpop.f32.mrb[55].mxu0 }
0x18b4   :  { %4966 = vtanh.f32 %v2470_v27 }
0x18be   :  { %v4967_v56 = vpop.eup %4966 }
0x18bf   :  { %4199 = vmatmul.mubr.f32.vlgmr.msra.gmra.mrb[28].mxu1 %v4967_v56 }
0x1992   :  { %v2561_v58 = vpop.f32.mrb[28].mxu1 }
0x1993   :  { %v2562_v31 = vadd.f32 %v2610_v57, %v2561_v58  ;;  %v4200_v13 = vpop.f32.mrb[29].mxu1 }
0x1995   :  { %2565 = vst [vmem:[#allocation3] sm:$0xff] %v2562_v31 }
0x1996   :  { %4980 = shalt.err (!%p4977_p4)
}
0x1997   :  { %s4981_s27 = scalar_lea.hbm %s5922_s6, 128 }
0x1998   :  { %p4982_p5 = scmp.ne.s32.totalorder %s5922_s6, %s4981_s27  ;;  %p4985_p6 = scmp.lt.u32.totalorder %s4981_s27, %s5922_s6 }
0x199a   :  { %p4987_p7 = pnand %p4985_p6, %p4982_p5 }
0x199c   :  { %4990 = shalt.err (!%p4987_p7)
}
0x199d   :  { %2575 = dma.vmem_to_hbm [thread:$0]  %s2573_s4, 128, %s5922_s6, [#allocation4]  }
0x199e   :  { %4991 = dma.done.wait [#allocation4], 128  }
0x199f   :  { %4992 = vsyncadd [#allocation4], 4294967168 }
0x19a0   :  { %2579 = vsyncpa [#allocation4], 1 }

</bundles_post_ra>
